<compile_context>
chip_gen: v7x
topology: tpu7x:2x2x1
jax: 0.10.0
libtpu: 0.0.40
codegen_flags: <defaults>
</compile_context>

<pallas_src>
import jax
import jax.numpy as jnp
from jax import lax
from jax.experimental import pallas as pl
from jax.experimental.pallas import tpu as pltpu

NODE_DIM = 52        # node_input_dim
HID = 52             # node_hidden_dim
HP = 128             # lane-padded hidden width (multiple of 128)
NUM_MP = 3           # num_step_message_passing
S2S_STEPS = 2        # num_step_set2set
TV_MAX = 512         # solvent-row tile for the interaction kernel
VMEM_LIMIT = 32 * 1024 * 1024   # raise for very large graphs (v5e default is 16 MiB)


def _round_up(x, m):
    return ((x + m - 1) // m) * m


def _pad_nodes(n):
    m = _round_up(max(n, 16), 16)
    if m > TV_MAX:
        m = _round_up(n, TV_MAX)
    return m


def _pad2(a, rows, cols):
    return jnp.pad(a, ((0, rows - a.shape[0]), (0, cols - a.shape[1])))


def _vmem():
    return pl.BlockSpec(memory_space=pltpu.MemorySpace.VMEM)


# ----------------------------------------------------------------------------
# GatherModel (simplified) -- both molecules in one kernel, grid=(2,) parallel.
# TODO(synk): the original GatherModel uses a DGL NNConv (edge-conditioned conv
# with an edge MLP) + GRU-style message layer; edge features are omitted here
# and neighbour aggregation is a dense row-normalised adjacency mean.
# TODO(synk): for graphs with >~2800 nodes on v7x, row-tile the adjacency
# matmul (grid over output-row tiles with h resident) to bound VMEM.
# ----------------------------------------------------------------------------
def gather_kernel(x_ref, adj_ref, w0_ref, b0_ref, wmm_ref, wmh_ref, bm_ref,
                  out_ref):
    x = x_ref[...]                                  # (N, HP) f32, zero-padded
    adj = adj_ref[...]                              # (N, N)  bf16
    h = jnp.maximum(
        jnp.dot(x.astype(jnp.bfloat16), w0_ref[...],
                preferred_element_type=jnp.float32) + b0_ref[...], 0.0)
    for _ in range(NUM_MP):
        hb = h.astype(jnp.bfloat16)
        m = jnp.maximum(
            jnp.dot(adj, hb, preferred_element_type=jnp.float32), 0.0)
        # message_layer(concat([m, h])) == m @ wm_m + h @ wm_h  (no concat copy)
        h = (jnp.dot(m.astype(jnp.bfloat16), wmm_ref[...],
                     preferred_element_type=jnp.float32)
             + jnp.dot(hb, wmh_ref[...], preferred_element_type=jnp.float32)
             + bm_ref[...])
    out_ref[...] = h + x       # residual with raw input features (CIGIN: out + init)


def gather_models(xs, adjs, w0s, b0s, wmms, wmhs, bms):
    _, n, _ = xs.shape

    def spec(r, c):
        return pl.BlockSpec((pl.Squeezed(), r, c), lambda g: (g, 0, 0))

    flops = 2 * (2 * n * HP * HP + NUM_MP * (2 * n * n * HP + 4 * n * HP * HP))
    bytes_accessed = (xs.size * 4 + adjs.size * 2
                      + (w0s.size + wmms.size + wmhs.size) * 2
                      + (b0s.size + bms.size) * 4 + 2 * n * HP * 4)
    return pl.pallas_call(
        gather_kernel,
        out_shape=jax.ShapeDtypeStruct((2, n, HP), jnp.float32),
        grid=(2,),
        in_specs=[spec(n, HP), spec(n, n), spec(HP, HP), spec(1, HP),
                  spec(HP, HP), spec(HP, HP), spec(1, HP)],
        out_specs=spec(n, HP),
        compiler_params=pltpu.CompilerParams(
            dimension_semantics=("parallel",),
            vmem_limit_bytes=VMEM_LIMIT),
        cost_estimate=pl.CostEstimate(flops=flops, transcendentals=0,
                                      bytes_accessed=bytes_accessed),
    )(xs, adjs, w0s, b0s, wmms, wmhs, bms)


# ----------------------------------------------------------------------------
# interaction(): F.normalize + batch-masked similarity map + back-projections.
# Solvent axis is tiled; solute' accumulates in a VMEM scratch.  No transposes,
# no concats; outputs are two 128-lane-aligned slices of a 256-wide buffer.
# ----------------------------------------------------------------------------
def interaction_kernel(su_ref, sv_ref, ub_ref, vb_ref,
                       su_out_ref, sv_out_ref, acc_ref):
    j = pl.program_id(0)

    def l2norm(v):  # F.normalize(v, dim=1), eps=1e-12
        nrm = jnp.sqrt(jnp.sum(v * v, axis=1, keepdims=True))
        return v / jnp.maximum(nrm, 1e-12)

    nsu = l2norm(su_ref[...])                 # (NuP, HP) f32
    nsv = l2norm(sv_ref[...])                 # (TV,  HP) f32
    nsu_b = nsu.astype(jnp.bfloat16)
    nsv_b = nsv.astype(jnp.bfloat16)

    # interaction map, contracting the feature axis of both operands (no .T)
    imap = lax.dot_general(nsu_b, nsv_b, (((1,), (1,)), ((), ())),
                           preferred_element_type=jnp.float32)   # (NuP, TV)
    # len_map equivalent: same-graph mask from batch ids (pure VPU compare)
    imap = jnp.where(ub_ref[...] == vb_ref[...], imap, 0.0)
    imap_b = imap.astype(jnp.bfloat16)

    @pl.when(j == 0)
    def _():
        acc_ref[...] = jnp.zeros_like(acc_ref)

    # solute' accumulates over solvent tiles
    acc_ref[...] += jnp.dot(imap_b, nsv_b, preferred_element_type=jnp.float32)

    # solvent' for this tile: contract imap over the solute axis (== imap.T @ nsu)
    sp_v = lax.dot_general(imap_b, nsu_b, (((0,), (0,)), ((), ())),
                           preferred_element_type=jnp.float32)    # (TV, HP)

    sv_out_ref[:, :HP] = nsv
    sv_out_ref[:, HP:] = sp_v

    @pl.when(j == pl.num_programs(0) - 1)
    def _():
        su_out_ref[:, :HP] = nsu
        su_out_ref[:, HP:] = acc_ref[...]


def interaction(su, sv, ub, vb):
    nu = su.shape[0]
    nv = sv.shape[0]
    tv = nv if nv <= TV_MAX else TV_MAX
    flops = 2 * nu * nv * HP * 3
    bytes_accessed = (su.size + sv.size + nu * 2 * HP + nv * 2 * HP) * 4
    return pl.pallas_call(
        interaction_kernel,
        out_shape=(jax.ShapeDtypeStruct((nu, 2 * HP), jnp.float32),
                   jax.ShapeDtypeStruct((nv, 2 * HP), jnp.float32)),
        grid=(nv // tv,),
        in_specs=[pl.BlockSpec((nu, HP), lambda j: (0, 0)),
                  pl.BlockSpec((tv, HP), lambda j: (j, 0)),
                  pl.BlockSpec((nu, 1), lambda j: (0, 0)),
                  pl.BlockSpec((1, tv), lambda j: (0, j))],
        out_specs=(pl.BlockSpec((nu, 2 * HP), lambda j: (0, 0)),
                   pl.BlockSpec((tv, 2 * HP), lambda j: (j, 0))),
        scratch_shapes=[pltpu.VMEM((nu, HP), jnp.float32)],
        compiler_params=pltpu.CompilerParams(
            dimension_semantics=("arbitrary",),
            vmem_limit_bytes=VMEM_LIMIT),
        cost_estimate=pl.CostEstimate(flops=flops, transcendentals=0,
                                      bytes_accessed=bytes_accessed),
    )(su, sv, ub, vb)


# ----------------------------------------------------------------------------
# predictor MLP: Linear(8H,256) -> ReLU -> Linear(256,128) -> ReLU -> Linear(128,1)
# ----------------------------------------------------------------------------
def predictor_kernel(x_ref, w1_ref, b1_ref, w2_ref, b2_ref, w3_ref, b3_ref,
                     out_ref):
    h = jnp.maximum(
        jnp.dot(x_ref[...].astype(jnp.bfloat16), w1_ref[...],
                preferred_element_type=jnp.float32) + b1_ref[...], 0.0)
    h = jnp.maximum(
        jnp.dot(h.astype(jnp.bfloat16), w2_ref[...],
                preferred_element_type=jnp.float32) + b2_ref[...], 0.0)
    out_ref[...] = (jnp.dot(h.astype(jnp.bfloat16), w3_ref[...],
                            preferred_element_type=jnp.float32) + b3_ref[...])


def predictor(x, params):
    b = x.shape[0]
    return pl.pallas_call(
        predictor_kernel,
        out_shape=jax.ShapeDtypeStruct((b, 1), jnp.float32),
        in_specs=[_vmem()] * 7,
        out_specs=_vmem(),
        compiler_params=pltpu.CompilerParams(vmem_limit_bytes=VMEM_LIMIT),
    )(x, params["w1"].astype(jnp.bfloat16), params["b1"],
      params["w2"].astype(jnp.bfloat16), params["b2"],
      params["w3"].astype(jnp.bfloat16), params["b3"])


# ----------------------------------------------------------------------------
# Set2Set (torch_geometric semantics): sequential LSTM + segment softmax
# readout, implemented with dense membership-matrix matmuls (no segment_*
# scatter/gather ops).  Kept in plain JAX (tiny, sequential).
# TODO(synk): could be fused into a small Pallas kernel if it ever shows up.
# ----------------------------------------------------------------------------
def set2set(x, memb, params):
    # x: (N, 2*HID) f32, memb: (B, N) one-hot membership (== solute_len)
    num_graphs, _ = memb.shape
    in_ch = x.shape[1]
    memb_t = memb.T
    h = jnp.zeros((num_graphs, in_ch), jnp.float32)
    c = jnp.zeros((num_graphs, in_ch), jnp.float32)
    q_star = jnp.zeros((num_graphs, 2 * in_ch), jnp.float32)
    for _ in range(S2S_STEPS):
        gates = (q_star @ params["w_ih"] + params["b_ih"]
                 + h @ params["w_hh"] + params["b_hh"])
        i, f, g, o = jnp.split(gates, 4, axis=1)
        i = jax.nn.sigmoid(i)
        f = jax.nn.sigmoid(f)
        g = jnp.tanh(g)
        o = jax.nn.sigmoid(o)
        c = f * c + i * g
        h = o * jnp.tanh(c)
        q = h
        e = jnp.sum(x * (memb_t @ q), axis=1)                     # (N,)
        e_max = jnp.max(jnp.where(memb > 0, e[None, :], -jnp.inf), axis=1)
        a = jnp.exp(e - memb_t @ e_max)
        a_sum = memb @ a
        a = a / (memb_t @ a_sum + 1e-16)
        r = memb @ (a[:, None] * x)                               # (B, in_ch)
        q_star = jnp.concatenate([q, r], axis=1)
    return q_star                                                 # (B, 4*HID)


# ----------------------------------------------------------------------------
# Parameter construction (xavier_uniform Linear weights, zero biases)
# ----------------------------------------------------------------------------
def _xavier(key, fan_in, fan_out):
    bound = (6.0 / (fan_in + fan_out)) ** 0.5
    return jax.random.uniform(key, (fan_in, fan_out), jnp.float32, -bound, bound)


def make_params(key):
    keys = jax.random.split(key, 11)
    params = {}
    for name, k0, k1 in (("solute_gather", keys[0], keys[1]),
                         ("solvent_gather", keys[2], keys[3])):
        params[name] = {
            "w0": _xavier(k0, NODE_DIM, HID),
            "b0": jnp.zeros((1, HID), jnp.float32),
            "wm": _xavier(k1, 2 * HID, HID),     # rows [:HID]=message, [HID:]=hidden
            "bm": jnp.zeros((1, HID), jnp.float32),
        }
    in_ch = 2 * HID                              # Set2Set in_channels = 104
    for name, k0 in (("s2s_solute", keys[4]), ("s2s_solvent", keys[5])):
        ks = 1.0 / (in_ch ** 0.5)
        ka, kb = jax.random.split(k0)
        params[name] = {
            "w_ih": jax.random.uniform(ka, (2 * in_ch, 4 * in_ch), jnp.float32, -ks, ks),
            "w_hh": jax.random.uniform(kb, (in_ch, 4 * in_ch), jnp.float32, -ks, ks),
            "b_ih": jnp.zeros((4 * in_ch,), jnp.float32),
            "b_hh": jnp.zeros((4 * in_ch,), jnp.float32),
        }
    params["predictor"] = {
        "w1": _xavier(keys[8], 8 * HID, 256),
        "b1": jnp.zeros((1, 256), jnp.float32),
        "w2": _xavier(keys[9], 256, 128),
        "b2": jnp.zeros((1, 128), jnp.float32),
        "w3": _xavier(keys[10], 128, 1),
        "b3": jnp.zeros((1, 1), jnp.float32),
    }
    return params


# ----------------------------------------------------------------------------
# CMRL forward, default path (causal=False, test=False)
# ----------------------------------------------------------------------------
@jax.jit
def cmrl_forward(params, solute_x, solute_adj, solute_batch, solute_len,
                 solvent_x, solvent_adj, solvent_batch, solvent_len):
    nu = solute_x.shape[0]
    nv = solvent_x.shape[0]
    n = _pad_nodes(max(nu, nv))

    # --- pad & stack inputs once for the fused (solute, solvent) gather call ---
    xs = jnp.stack([_pad2(solute_x, n, HP), _pad2(solvent_x, n, HP)])
    adjs = jnp.stack([_pad2(solute_adj, n, n),
                      _pad2(solvent_adj, n, n)]).astype(jnp.bfloat16)

    def gp(p):  # pad one GatherModel's params to the lane-dense (HP, HP) layout
        return (_pad2(p["w0"], HP, HP).astype(jnp.bfloat16),
                _pad2(p["b0"], 1, HP),
                _pad2(p["wm"][:HID], HP, HP).astype(jnp.bfloat16),
                _pad2(p["wm"][HID:], HP, HP).astype(jnp.bfloat16),
                _pad2(p["bm"], 1, HP))

    su_p = gp(params["solute_gather"])
    sv_p = gp(params["solvent_gather"])
    w0s, b0s, wmms, wmhs, bms = (jnp.stack(t) for t in zip(su_p, sv_p))

    feats = gather_models(xs, adjs, w0s, b0s, wmms, wmhs, bms)   # (2, n, HP)

    # --- interaction (masked similarity + back-projections) ---
    ub = jnp.pad(solute_batch, (0, n - nu), constant_values=-1).reshape(n, 1)
    vb = jnp.pad(solvent_batch, (0, n - nv), constant_values=-2).reshape(1, n)
    su_cat, sv_cat = interaction(feats[0], feats[1], ub, vb)     # (n, 2*HP) each

    # strip lane padding / padded rows -> reference (N, 2*HID) features
    su_f = jnp.concatenate([su_cat[:nu, :HID], su_cat[:nu, HP:HP + HID]], axis=1)
    sv_f = jnp.concatenate([sv_cat[:nv, :HID], sv_cat[:nv, HP:HP + HID]], axis=1)

    su_s2s = set2set(su_f, solute_len, params["s2s_solute"])
    sv_s2s = set2set(sv_f, solvent_len, params["s2s_solvent"])

    solute_solvent = jnp.concatenate([su_s2s, sv_s2s], axis=1)   # (B, 8*HID)
    return predictor(solute_solvent, params["predictor"])


# ----------------------------------------------------------------------------
# deterministic synthetic graph batch
# ----------------------------------------------------------------------------
def make_graph_batch(key, nodes_per_graph):
    num_graphs = len(nodes_per_graph)
    n = int(sum(nodes_per_graph))
    x = jax.random.normal(key, (n, NODE_DIM), jnp.float32)
    batch = jnp.concatenate([jnp.full((c,), g, dtype=jnp.int32)
                             for g, c in enumerate(nodes_per_graph)])
    memb = jax.nn.one_hot(batch, num_graphs, dtype=jnp.float32).T    # (B, n) == len
    adj = memb.T @ memb                                              # same-graph mask
    adj = adj / jnp.maximum(jnp.sum(adj, axis=1, keepdims=True), 1.0)  # eps-safe mean
    return x, adj.astype(jnp.float32), batch, memb


if __name__ == "__main__":
    key = jax.random.PRNGKey(0)
    k_params, k_solute, k_solvent = jax.random.split(key, 3)

    params = make_params(k_params)

    # 2 graphs: solute with [5, 3] nodes (Nu=8), solvent with [7, 6] nodes (Nv=13)
    solute_x, solute_adj, solute_batch, solute_len = make_graph_batch(
        k_solute, (5, 3))
    solvent_x, solvent_adj, solvent_batch, solvent_len = make_graph_batch(
        k_solvent, (7, 6))
    num_graphs = 2

    preds = cmrl_forward(params,
                         solute_x, solute_adj, solute_batch, solute_len,
                         solvent_x, solvent_adj, solvent_batch, solvent_len)
    preds = jax.block_until_ready(preds)
    assert preds.shape == (num_graphs, 1)
    assert bool(jnp.all(jnp.isfinite(preds)))
    print("KERNEL_OK")
</pallas_src>

<mosaic_0001>
module attributes {stable_mosaic.version = 11 : i64} {
  func.func @gather_kernel(%arg0: i32, %arg1: memref<1x16x128xf32, #tpu.memory_space<vmem>>, %arg2: memref<1x16x16xbf16, #tpu.memory_space<vmem>>, %arg3: memref<1x128x128xbf16, #tpu.memory_space<vmem>>, %arg4: memref<1x1x128xf32, #tpu.memory_space<vmem>>, %arg5: memref<1x128x128xbf16, #tpu.memory_space<vmem>>, %arg6: memref<1x128x128xbf16, #tpu.memory_space<vmem>>, %arg7: memref<1x1x128xf32, #tpu.memory_space<vmem>>, %arg8: memref<1x16x128xf32, #tpu.memory_space<vmem>>) attributes {dimension_semantics = [#tpu.dimension_semantics<parallel>], iteration_bounds = array<i64: 2>, scalar_prefetch = 0 : i64, scratch_operands = 0 : i64, tpu.core_type = #tpu.core_type<tc>, window_params = [{transform_indices = @transform_0, window_bounds = array<i64: 1, 16, 128>}, {transform_indices = @transform_1, window_bounds = array<i64: 1, 16, 16>}, {transform_indices = @transform_2, window_bounds = array<i64: 1, 128, 128>}, {transform_indices = @transform_3, window_bounds = array<i64: 1, 1, 128>}, {transform_indices = @transform_4, window_bounds = array<i64: 1, 128, 128>}, {transform_indices = @transform_5, window_bounds = array<i64: 1, 128, 128>}, {transform_indices = @transform_6, window_bounds = array<i64: 1, 1, 128>}, {transform_indices = @transform_7, window_bounds = array<i64: 1, 16, 128>}]} {
    %c0 = arith.constant 0 : index
    %c0_0 = arith.constant 0 : index
    %c0_1 = arith.constant 0 : index
    %0 = vector.load %arg1[%c0, %c0_0, %c0_1] : memref<1x16x128xf32, #tpu.memory_space<vmem>>, vector<1x16x128xf32>
    %1 = vector.shape_cast %0 : vector<1x16x128xf32> to vector<16x128xf32>
    %c0_2 = arith.constant 0 : index
    %c0_3 = arith.constant 0 : index
    %c0_4 = arith.constant 0 : index
    %2 = vector.load %arg2[%c0_2, %c0_3, %c0_4] : memref<1x16x16xbf16, #tpu.memory_space<vmem>>, vector<1x16x16xbf16>
    %3 = vector.shape_cast %2 : vector<1x16x16xbf16> to vector<16x16xbf16>
    %4 = arith.truncf %1 : vector<16x128xf32> to vector<16x128xbf16>
    %c0_5 = arith.constant 0 : index
    %c0_6 = arith.constant 0 : index
    %c0_7 = arith.constant 0 : index
    %5 = vector.load %arg3[%c0_5, %c0_6, %c0_7] : memref<1x128x128xbf16, #tpu.memory_space<vmem>>, vector<1x128x128xbf16>
    %6 = vector.shape_cast %5 : vector<1x128x128xbf16> to vector<128x128xbf16>
    %cst = arith.constant dense<0.000000e+00> : vector<16x128xf32>
    %7 = tpu.matmul %4, %6, %cst {dimension_numbers = #tpu.dot_dimension_numbers<[1], [0], [0], [1], [0, 0, 1, 1], [], []>} : vector<16x128xbf16>, vector<128x128xbf16>, vector<16x128xf32> -> vector<16x128xf32>
    %c0_8 = arith.constant 0 : index
    %c0_9 = arith.constant 0 : index
    %c0_10 = arith.constant 0 : index
    %8 = vector.load %arg4[%c0_8, %c0_9, %c0_10] : memref<1x1x128xf32, #tpu.memory_space<vmem>>, vector<1x1x128xf32>
    %9 = vector.shape_cast %8 : vector<1x1x128xf32> to vector<1x128xf32>
    %10 = vector.broadcast %9 : vector<1x128xf32> to vector<16x128xf32>
    %11 = arith.addf %7, %10 : vector<16x128xf32>
    %cst_11 = arith.constant 0.000000e+00 : f32
    %12 = vector.broadcast %cst_11 : f32 to vector<16x128xf32>
    %13 = arith.maximumf %11, %12 : vector<16x128xf32>
    %14 = arith.truncf %13 : vector<16x128xf32> to vector<16x128xbf16>
    %cst_12 = arith.constant dense<0.000000e+00> : vector<16x128xf32>
    %15 = tpu.matmul %3, %14, %cst_12 {dimension_numbers = #tpu.dot_dimension_numbers<[1], [0], [0], [1], [0, 0, 1, 1], [], []>} : vector<16x16xbf16>, vector<16x128xbf16>, vector<16x128xf32> -> vector<16x128xf32>
    %cst_13 = arith.constant 0.000000e+00 : f32
    %16 = vector.broadcast %cst_13 : f32 to vector<16x128xf32>
    %17 = arith.maximumf %15, %16 : vector<16x128xf32>
    %18 = arith.truncf %17 : vector<16x128xf32> to vector<16x128xbf16>
    %c0_14 = arith.constant 0 : index
    %c0_15 = arith.constant 0 : index
    %c0_16 = arith.constant 0 : index
    %19 = vector.load %arg5[%c0_14, %c0_15, %c0_16] : memref<1x128x128xbf16, #tpu.memory_space<vmem>>, vector<1x128x128xbf16>
    %20 = vector.shape_cast %19 : vector<1x128x128xbf16> to vector<128x128xbf16>
    %cst_17 = arith.constant dense<0.000000e+00> : vector<16x128xf32>
    %21 = tpu.matmul %18, %20, %cst_17 {dimension_numbers = #tpu.dot_dimension_numbers<[1], [0], [0], [1], [0, 0, 1, 1], [], []>} : vector<16x128xbf16>, vector<128x128xbf16>, vector<16x128xf32> -> vector<16x128xf32>
    %c0_18 = arith.constant 0 : index
    %c0_19 = arith.constant 0 : index
    %c0_20 = arith.constant 0 : index
    %22 = vector.load %arg6[%c0_18, %c0_19, %c0_20] : memref<1x128x128xbf16, #tpu.memory_space<vmem>>, vector<1x128x128xbf16>
    %23 = vector.shape_cast %22 : vector<1x128x128xbf16> to vector<128x128xbf16>
    %cst_21 = arith.constant dense<0.000000e+00> : vector<16x128xf32>
    %24 = tpu.matmul %14, %23, %cst_21 {dimension_numbers = #tpu.dot_dimension_numbers<[1], [0], [0], [1], [0, 0, 1, 1], [], []>} : vector<16x128xbf16>, vector<128x128xbf16>, vector<16x128xf32> -> vector<16x128xf32>
    %25 = arith.addf %21, %24 : vector<16x128xf32>
    %c0_22 = arith.constant 0 : index
    %c0_23 = arith.constant 0 : index
    %c0_24 = arith.constant 0 : index
    %26 = vector.load %arg7[%c0_22, %c0_23, %c0_24] : memref<1x1x128xf32, #tpu.memory_space<vmem>>, vector<1x1x128xf32>
    %27 = vector.shape_cast %26 : vector<1x1x128xf32> to vector<1x128xf32>
    %28 = vector.broadcast %27 : vector<1x128xf32> to vector<16x128xf32>
    %29 = arith.addf %25, %28 : vector<16x128xf32>
    %30 = arith.truncf %29 : vector<16x128xf32> to vector<16x128xbf16>
    %cst_25 = arith.constant dense<0.000000e+00> : vector<16x128xf32>
    %31 = tpu.matmul %3, %30, %cst_25 {dimension_numbers = #tpu.dot_dimension_numbers<[1], [0], [0], [1], [0, 0, 1, 1], [], []>} : vector<16x16xbf16>, vector<16x128xbf16>, vector<16x128xf32> -> vector<16x128xf32>
    %cst_26 = arith.constant 0.000000e+00 : f32
    %32 = vector.broadcast %cst_26 : f32 to vector<16x128xf32>
    %33 = arith.maximumf %31, %32 : vector<16x128xf32>
    %34 = arith.truncf %33 : vector<16x128xf32> to vector<16x128xbf16>
    %c0_27 = arith.constant 0 : index
    %c0_28 = arith.constant 0 : index
    %c0_29 = arith.constant 0 : index
    %35 = vector.load %arg5[%c0_27, %c0_28, %c0_29] : memref<1x128x128xbf16, #tpu.memory_space<vmem>>, vector<1x128x128xbf16>
    %36 = vector.shape_cast %35 : vector<1x128x128xbf16> to vector<128x128xbf16>
    %cst_30 = arith.constant dense<0.000000e+00> : vector<16x128xf32>
    %37 = tpu.matmul %34, %36, %cst_30 {dimension_numbers = #tpu.dot_dimension_numbers<[1], [0], [0], [1], [0, 0, 1, 1], [], []>} : vector<16x128xbf16>, vector<128x128xbf16>, vector<16x128xf32> -> vector<16x128xf32>
    %c0_31 = arith.constant 0 : index
    %c0_32 = arith.constant 0 : index
    %c0_33 = arith.constant 0 : index
    %38 = vector.load %arg6[%c0_31, %c0_32, %c0_33] : memref<1x128x128xbf16, #tpu.memory_space<vmem>>, vector<1x128x128xbf16>
    %39 = vector.shape_cast %38 : vector<1x128x128xbf16> to vector<128x128xbf16>
    %cst_34 = arith.constant dense<0.000000e+00> : vector<16x128xf32>
    %40 = tpu.matmul %30, %39, %cst_34 {dimension_numbers = #tpu.dot_dimension_numbers<[1], [0], [0], [1], [0, 0, 1, 1], [], []>} : vector<16x128xbf16>, vector<128x128xbf16>, vector<16x128xf32> -> vector<16x128xf32>
    %41 = arith.addf %37, %40 : vector<16x128xf32>
    %c0_35 = arith.constant 0 : index
    %c0_36 = arith.constant 0 : index
    %c0_37 = arith.constant 0 : index
    %42 = vector.load %arg7[%c0_35, %c0_36, %c0_37] : memref<1x1x128xf32, #tpu.memory_space<vmem>>, vector<1x1x128xf32>
    %43 = vector.shape_cast %42 : vector<1x1x128xf32> to vector<1x128xf32>
    %44 = vector.broadcast %43 : vector<1x128xf32> to vector<16x128xf32>
    %45 = arith.addf %41, %44 : vector<16x128xf32>
    %46 = arith.truncf %45 : vector<16x128xf32> to vector<16x128xbf16>
    %cst_38 = arith.constant dense<0.000000e+00> : vector<16x128xf32>
    %47 = tpu.matmul %3, %46, %cst_38 {dimension_numbers = #tpu.dot_dimension_numbers<[1], [0], [0], [1], [0, 0, 1, 1], [], []>} : vector<16x16xbf16>, vector<16x128xbf16>, vector<16x128xf32> -> vector<16x128xf32>
    %cst_39 = arith.constant 0.000000e+00 : f32
    %48 = vector.broadcast %cst_39 : f32 to vector<16x128xf32>
    %49 = arith.maximumf %47, %48 : vector<16x128xf32>
    %50 = arith.truncf %49 : vector<16x128xf32> to vector<16x128xbf16>
    %c0_40 = arith.constant 0 : index
    %c0_41 = arith.constant 0 : index
    %c0_42 = arith.constant 0 : index
    %51 = vector.load %arg5[%c0_40, %c0_41, %c0_42] : memref<1x128x128xbf16, #tpu.memory_space<vmem>>, vector<1x128x128xbf16>
    %52 = vector.shape_cast %51 : vector<1x128x128xbf16> to vector<128x128xbf16>
    %cst_43 = arith.constant dense<0.000000e+00> : vector<16x128xf32>
    %53 = tpu.matmul %50, %52, %cst_43 {dimension_numbers = #tpu.dot_dimension_numbers<[1], [0], [0], [1], [0, 0, 1, 1], [], []>} : vector<16x128xbf16>, vector<128x128xbf16>, vector<16x128xf32> -> vector<16x128xf32>
    %c0_44 = arith.constant 0 : index
    %c0_45 = arith.constant 0 : index
    %c0_46 = arith.constant 0 : index
    %54 = vector.load %arg6[%c0_44, %c0_45, %c0_46] : memref<1x128x128xbf16, #tpu.memory_space<vmem>>, vector<1x128x128xbf16>
    %55 = vector.shape_cast %54 : vector<1x128x128xbf16> to vector<128x128xbf16>
    %cst_47 = arith.constant dense<0.000000e+00> : vector<16x128xf32>
    %56 = tpu.matmul %46, %55, %cst_47 {dimension_numbers = #tpu.dot_dimension_numbers<[1], [0], [0], [1], [0, 0, 1, 1], [], []>} : vector<16x128xbf16>, vector<128x128xbf16>, vector<16x128xf32> -> vector<16x128xf32>
    %57 = arith.addf %53, %56 : vector<16x128xf32>
    %c0_48 = arith.constant 0 : index
    %c0_49 = arith.constant 0 : index
    %c0_50 = arith.constant 0 : index
    %58 = vector.load %arg7[%c0_48, %c0_49, %c0_50] : memref<1x1x128xf32, #tpu.memory_space<vmem>>, vector<1x1x128xf32>
    %59 = vector.shape_cast %58 : vector<1x1x128xf32> to vector<1x128xf32>
    %60 = vector.broadcast %59 : vector<1x128xf32> to vector<16x128xf32>
    %61 = arith.addf %57, %60 : vector<16x128xf32>
    %62 = arith.addf %61, %1 : vector<16x128xf32>
    %c0_51 = arith.constant 0 : index
    %c0_52 = arith.constant 0 : index
    %c0_53 = arith.constant 0 : index
    %63 = vector.load %arg8[%c0_51, %c0_52, %c0_53] : memref<1x16x128xf32, #tpu.memory_space<vmem>>, vector<1x16x128xf32>
    %64 = vector.shape_cast %63 : vector<1x16x128xf32> to vector<16x128xf32>
    %65 = vector.shape_cast %62 : vector<16x128xf32> to vector<1x16x128xf32>
    tpu.vector_store %arg8[%c0_51, %c0_52, %c0_53], %65 {strides = array<i32>} : memref<1x16x128xf32, #tpu.memory_space<vmem>>, vector<1x16x128xf32>,
    return
  }
  func.func @transform_0(%arg0: i32) -> (i32, i32, i32) {
    %c0_i32 = arith.constant 0 : i32
    %c0_i32_0 = arith.constant 0 : i32
    %c0_i32_1 = arith.constant 0 : i32
    return %arg0, %c0_i32, %c0_i32_0 : i32, i32, i32
  }
  func.func @transform_1(%arg0: i32) -> (i32, i32, i32) {
    %c0_i32 = arith.constant 0 : i32
    %c0_i32_0 = arith.constant 0 : i32
    %c0_i32_1 = arith.constant 0 : i32
    return %arg0, %c0_i32, %c0_i32_0 : i32, i32, i32
  }
  func.func @transform_2(%arg0: i32) -> (i32, i32, i32) {
    %c0_i32 = arith.constant 0 : i32
    %c0_i32_0 = arith.constant 0 : i32
    %c0_i32_1 = arith.constant 0 : i32
    return %arg0, %c0_i32, %c0_i32_0 : i32, i32, i32
  }
  func.func @transform_3(%arg0: i32) -> (i32, i32, i32) {
    %c0_i32 = arith.constant 0 : i32
    %c0_i32_0 = arith.constant 0 : i32
    %c0_i32_1 = arith.constant 0 : i32
    return %arg0, %c0_i32, %c0_i32_0 : i32, i32, i32
  }
  func.func @transform_4(%arg0: i32) -> (i32, i32, i32) {
    %c0_i32 = arith.constant 0 : i32
    %c0_i32_0 = arith.constant 0 : i32
    %c0_i32_1 = arith.constant 0 : i32
    return %arg0, %c0_i32, %c0_i32_0 : i32, i32, i32
  }
  func.func @transform_5(%arg0: i32) -> (i32, i32, i32) {
    %c0_i32 = arith.constant 0 : i32
    %c0_i32_0 = arith.constant 0 : i32
    %c0_i32_1 = arith.constant 0 : i32
    return %arg0, %c0_i32, %c0_i32_0 : i32, i32, i32
  }
  func.func @transform_6(%arg0: i32) -> (i32, i32, i32) {
    %c0_i32 = arith.constant 0 : i32
    %c0_i32_0 = arith.constant 0 : i32
    %c0_i32_1 = arith.constant 0 : i32
    return %arg0, %c0_i32, %c0_i32_0 : i32, i32, i32
  }
  func.func @transform_7(%arg0: i32) -> (i32, i32, i32) {
    %c0_i32 = arith.constant 0 : i32
    %c0_i32_0 = arith.constant 0 : i32
    %c0_i32_1 = arith.constant 0 : i32
    return %arg0, %c0_i32, %c0_i32_0 : i32, i32, i32
  }
}

module attributes {stable_mosaic.version = 11 : i64} {
  func.func @interaction_kernel(%arg0: i32, %arg1: memref<16x128xf32, #tpu.memory_space<vmem>>, %arg2: memref<16x128xf32, #tpu.memory_space<vmem>>, %arg3: memref<16x1xi32, #tpu.memory_space<vmem>>, %arg4: memref<1x16xi32, #tpu.memory_space<vmem>>, %arg5: memref<16x256xf32, #tpu.memory_space<vmem>>, %arg6: memref<16x256xf32, #tpu.memory_space<vmem>>, %arg7: memref<16x128xf32, #tpu.memory_space<vmem>>) attributes {dimension_semantics = [#tpu.dimension_semantics<arbitrary>], iteration_bounds = array<i64: 1>, scalar_prefetch = 0 : i64, scratch_operands = 1 : i64, tpu.core_type = #tpu.core_type<tc>, window_params = [{pipeline_mode = #tpu.pipeline_mode<synchronous>, transform_indices = @transform_0, window_bounds = array<i64: 16, 128>}, {transform_indices = @transform_1, window_bounds = array<i64: 16, 128>}, {pipeline_mode = #tpu.pipeline_mode<synchronous>, transform_indices = @transform_2, window_bounds = array<i64: 16, 1>}, {transform_indices = @transform_3, window_bounds = array<i64: 1, 16>}, {pipeline_mode = #tpu.pipeline_mode<synchronous>, transform_indices = @transform_4, window_bounds = array<i64: 16, 256>}, {transform_indices = @transform_5, window_bounds = array<i64: 16, 256>}]} {
    %c0 = arith.constant 0 : index
    %c0_0 = arith.constant 0 : index
    %0 = vector.load %arg1[%c0, %c0_0] : memref<16x128xf32, #tpu.memory_space<vmem>>, vector<16x128xf32>
    %1 = arith.mulf %0, %0 : vector<16x128xf32>
    %cst = arith.constant dense<0.000000e+00> : vector<16xf32>
    %2 = vector.multi_reduction <add>, %1, %cst [1] : vector<16x128xf32> to vector<16xf32>
    %3 = vector.shape_cast %2 : vector<16xf32> to vector<16x1xf32>
    %4 = math.sqrt %3 : vector<16x1xf32>
    %cst_1 = arith.constant 9.99999996E-13 : f32
    %5 = vector.broadcast %cst_1 : f32 to vector<16x1xf32>
    %6 = arith.maximumf %4, %5 : vector<16x1xf32>
    %7 = vector.broadcast %6 : vector<16x1xf32> to vector<16x128xf32>
    %8 = arith.divf %0, %7 : vector<16x128xf32>
    %c0_2 = arith.constant 0 : index
    %c0_3 = arith.constant 0 : index
    %9 = vector.load %arg2[%c0_2, %c0_3] : memref<16x128xf32, #tpu.memory_space<vmem>>, vector<16x128xf32>
    %10 = arith.mulf %9, %9 : vector<16x128xf32>
    %cst_4 = arith.constant dense<0.000000e+00> : vector<16xf32>
    %11 = vector.multi_reduction <add>, %10, %cst_4 [1] : vector<16x128xf32> to vector<16xf32>
    %12 = vector.shape_cast %11 : vector<16xf32> to vector<16x1xf32>
    %13 = math.sqrt %12 : vector<16x1xf32>
    %cst_5 = arith.constant 9.99999996E-13 : f32
    %14 = vector.broadcast %cst_5 : f32 to vector<16x1xf32>
    %15 = arith.maximumf %13, %14 : vector<16x1xf32>
    %16 = vector.broadcast %15 : vector<16x1xf32> to vector<16x128xf32>
    %17 = arith.divf %9, %16 : vector<16x128xf32>
    %18 = arith.truncf %8 : vector<16x128xf32> to vector<16x128xbf16>
    %19 = arith.truncf %17 : vector<16x128xf32> to vector<16x128xbf16>
    %cst_6 = arith.constant dense<0.000000e+00> : vector<16x16xf32>
    %20 = tpu.matmul %18, %19, %cst_6 {dimension_numbers = #tpu.dot_dimension_numbers<[1], [1], [0], [0], [0, 0, 1, 0], [], []>} : vector<16x128xbf16>, vector<16x128xbf16>, vector<16x16xf32> -> vector<16x16xf32>
    %c0_7 = arith.constant 0 : index
    %c0_8 = arith.constant 0 : index
    %21 = vector.load %arg3[%c0_7, %c0_8] : memref<16x1xi32, #tpu.memory_space<vmem>>, vector<16x1xi32>
    %c0_9 = arith.constant 0 : index
    %c0_10 = arith.constant 0 : index
    %22 = vector.load %arg4[%c0_9, %c0_10] : memref<1x16xi32, #tpu.memory_space<vmem>>, vector<1x16xi32>
    %23 = vector.broadcast %21 : vector<16x1xi32> to vector<16x16xi32>
    %24 = vector.broadcast %22 : vector<1x16xi32> to vector<16x16xi32>
    %25 = arith.cmpi eq, %23, %24 : vector<16x16xi32>
    %cst_11 = arith.constant 0.000000e+00 : f32
    %26 = vector.broadcast %cst_11 : f32 to vector<16x16xf32>
    %27 = arith.select %25, %20, %26 : vector<16x16xi1>, vector<16x16xf32>
    %28 = arith.truncf %27 : vector<16x16xf32> to vector<16x16xbf16>
    %c0_i32 = arith.constant 0 : i32
    %29 = arith.cmpi eq, %arg0, %c0_i32 : i32
    %30 = arith.extui %29 : i1 to i32
    %c0_i32_12 = arith.constant 0 : i32
    %31 = arith.cmpi ne, %30, %c0_i32_12 : i32
    scf.if %31 {
      %cst_24 = arith.constant 0.000000e+00 : f32
      %42 = vector.broadcast %cst_24 : f32 to vector<16x128xf32>
      %c0_25 = arith.constant 0 : index
      %c0_26 = arith.constant 0 : index
      %43 = vector.load %arg7[%c0_25, %c0_26] : memref<16x128xf32, #tpu.memory_space<vmem>>, vector<16x128xf32>
      tpu.vector_store %arg7[%c0_25, %c0_26], %42 {strides = array<i32>} : memref<16x128xf32, #tpu.memory_space<vmem>>, vector<16x128xf32>,
    } else {
    }
    %c0_13 = arith.constant 0 : index
    %c0_14 = arith.constant 0 : index
    %32 = vector.load %arg7[%c0_13, %c0_14] : memref<16x128xf32, #tpu.memory_space<vmem>>, vector<16x128xf32>
    %cst_15 = arith.constant dense<0.000000e+00> : vector<16x128xf32>
    %33 = tpu.matmul %28, %19, %cst_15 {dimension_numbers = #tpu.dot_dimension_numbers<[1], [0], [0], [1], [0, 0, 1, 1], [], []>} : vector<16x16xbf16>, vector<16x128xbf16>, vector<16x128xf32> -> vector<16x128xf32>
    %34 = arith.addf %32, %33 : vector<16x128xf32>
    %c0_16 = arith.constant 0 : index
    %c0_17 = arith.constant 0 : index
    %35 = vector.load %arg7[%c0_16, %c0_17] : memref<16x128xf32, #tpu.memory_space<vmem>>, vector<16x128xf32>
    tpu.vector_store %arg7[%c0_16, %c0_17], %34 {strides = array<i32>} : memref<16x128xf32, #tpu.memory_space<vmem>>, vector<16x128xf32>,
    %cst_18 = arith.constant dense<0.000000e+00> : vector<16x128xf32>
    %36 = tpu.matmul %28, %18, %cst_18 {dimension_numbers = #tpu.dot_dimension_numbers<[0], [0], [1], [1], [0, 1, 1, 1], [], []>} : vector<16x16xbf16>, vector<16x128xbf16>, vector<16x128xf32> -> vector<16x128xf32>
    %c0_19 = arith.constant 0 : index
    %c0_20 = arith.constant 0 : index
    %37 = vector.load %arg6[%c0_19, %c0_20] : memref<16x256xf32, #tpu.memory_space<vmem>>, vector<16x128xf32>
    tpu.vector_store %arg6[%c0_19, %c0_20], %17 {strides = array<i32>} : memref<16x256xf32, #tpu.memory_space<vmem>>, vector<16x128xf32>,
    %c0_21 = arith.constant 0 : index
    %c128 = arith.constant 128 : index
    %38 = vector.load %arg6[%c0_21, %c128] : memref<16x256xf32, #tpu.memory_space<vmem>>, vector<16x128xf32>
    tpu.vector_store %arg6[%c0_21, %c128], %36 {strides = array<i32>} : memref<16x256xf32, #tpu.memory_space<vmem>>, vector<16x128xf32>,
    %c0_i32_22 = arith.constant 0 : i32
    %39 = arith.cmpi eq, %arg0, %c0_i32_22 : i32
    %40 = arith.extui %39 : i1 to i32
    %c0_i32_23 = arith.constant 0 : i32
    %41 = arith.cmpi ne, %40, %c0_i32_23 : i32
    scf.if %41 {
      %c0_24 = arith.constant 0 : index
      %c0_25 = arith.constant 0 : index
      %42 = vector.load %arg5[%c0_24, %c0_25] : memref<16x256xf32, #tpu.memory_space<vmem>>, vector<16x128xf32>
      tpu.vector_store %arg5[%c0_24, %c0_25], %8 {strides = array<i32>} : memref<16x256xf32, #tpu.memory_space<vmem>>, vector<16x128xf32>,
      %c0_26 = arith.constant 0 : index
      %c0_27 = arith.constant 0 : index
      %43 = vector.load %arg7[%c0_26, %c0_27] : memref<16x128xf32, #tpu.memory_space<vmem>>, vector<16x128xf32>
      %c0_28 = arith.constant 0 : index
      %c128_29 = arith.constant 128 : index
      %44 = vector.load %arg5[%c0_28, %c128_29] : memref<16x256xf32, #tpu.memory_space<vmem>>, vector<16x128xf32>
      tpu.vector_store %arg5[%c0_28, %c128_29], %43 {strides = array<i32>} : memref<16x256xf32, #tpu.memory_space<vmem>>, vector<16x128xf32>,
    } else {
    }
    return
  }
  func.func @transform_0(%arg0: i32) -> (i32, i32) {
    %c0_i32 = arith.constant 0 : i32
    %c0_i32_0 = arith.constant 0 : i32
    %c0_i32_1 = arith.constant 0 : i32
    return %c0_i32, %c0_i32_0 : i32, i32
  }
  func.func @transform_1(%arg0: i32) -> (i32, i32) {
    %c0_i32 = arith.constant 0 : i32
    %c0_i32_0 = arith.constant 0 : i32
    return %arg0, %c0_i32 : i32, i32
  }
  func.func @transform_2(%arg0: i32) -> (i32, i32) {
    %c0_i32 = arith.constant 0 : i32
    %c0_i32_0 = arith.constant 0 : i32
    %c0_i32_1 = arith.constant 0 : i32
    return %c0_i32, %c0_i32_0 : i32, i32
  }
  func.func @transform_3(%arg0: i32) -> (i32, i32) {
    %c0_i32 = arith.constant 0 : i32
    %c0_i32_0 = arith.constant 0 : i32
    return %c0_i32, %arg0 : i32, i32
  }
  func.func @transform_4(%arg0: i32) -> (i32, i32) {
    %c0_i32 = arith.constant 0 : i32
    %c0_i32_0 = arith.constant 0 : i32
    %c0_i32_1 = arith.constant 0 : i32
    return %c0_i32, %c0_i32_0 : i32, i32
  }
  func.func @transform_5(%arg0: i32) -> (i32, i32) {
    %c0_i32 = arith.constant 0 : i32
    %c0_i32_0 = arith.constant 0 : i32
    return %arg0, %c0_i32 : i32, i32
  }
}

module attributes {stable_mosaic.version = 11 : i64} {
  func.func @predictor_kernel(%arg0: memref<2x416xf32, #tpu.memory_space<vmem>>, %arg1: memref<416x256xbf16, #tpu.memory_space<vmem>>, %arg2: memref<1x256xf32, #tpu.memory_space<vmem>>, %arg3: memref<256x128xbf16, #tpu.memory_space<vmem>>, %arg4: memref<1x128xf32, #tpu.memory_space<vmem>>, %arg5: memref<128x1xbf16, #tpu.memory_space<vmem>>, %arg6: memref<1x1xf32, #tpu.memory_space<vmem>>, %arg7: memref<2x1xf32, #tpu.memory_space<vmem>>) attributes {dimension_semantics = [], scalar_prefetch = 0 : i64, scratch_operands = 0 : i64, tpu.core_type = #tpu.core_type<tc>} {
    %c0 = arith.constant 0 : index
    %c0_0 = arith.constant 0 : index
    %0 = vector.load %arg0[%c0, %c0_0] : memref<2x416xf32, #tpu.memory_space<vmem>>, vector<2x416xf32>
    %1 = arith.truncf %0 : vector<2x416xf32> to vector<2x416xbf16>
    %c0_1 = arith.constant 0 : index
    %c0_2 = arith.constant 0 : index
    %2 = vector.load %arg1[%c0_1, %c0_2] : memref<416x256xbf16, #tpu.memory_space<vmem>>, vector<416x256xbf16>
    %cst = arith.constant dense<0.000000e+00> : vector<2x256xf32>
    %3 = tpu.matmul %1, %2, %cst {dimension_numbers = #tpu.dot_dimension_numbers<[1], [0], [0], [1], [0, 0, 1, 1], [], []>} : vector<2x416xbf16>, vector<416x256xbf16>, vector<2x256xf32> -> vector<2x256xf32>
    %c0_3 = arith.constant 0 : index
    %c0_4 = arith.constant 0 : index
    %4 = vector.load %arg2[%c0_3, %c0_4] : memref<1x256xf32, #tpu.memory_space<vmem>>, vector<1x256xf32>
    %5 = vector.broadcast %4 : vector<1x256xf32> to vector<2x256xf32>
    %6 = arith.addf %3, %5 : vector<2x256xf32>
    %cst_5 = arith.constant 0.000000e+00 : f32
    %7 = vector.broadcast %cst_5 : f32 to vector<2x256xf32>
    %8 = arith.maximumf %6, %7 : vector<2x256xf32>
    %9 = arith.truncf %8 : vector<2x256xf32> to vector<2x256xbf16>
    %c0_6 = arith.constant 0 : index
    %c0_7 = arith.constant 0 : index
    %10 = vector.load %arg3[%c0_6, %c0_7] : memref<256x128xbf16, #tpu.memory_space<vmem>>, vector<256x128xbf16>
    %cst_8 = arith.constant dense<0.000000e+00> : vector<2x128xf32>
    %11 = tpu.matmul %9, %10, %cst_8 {dimension_numbers = #tpu.dot_dimension_numbers<[1], [0], [0], [1], [0, 0, 1, 1], [], []>} : vector<2x256xbf16>, vector<256x128xbf16>, vector<2x128xf32> -> vector<2x128xf32>
    %c0_9 = arith.constant 0 : index
    %c0_10 = arith.constant 0 : index
    %12 = vector.load %arg4[%c0_9, %c0_10] : memref<1x128xf32, #tpu.memory_space<vmem>>, vector<1x128xf32>
    %13 = vector.broadcast %12 : vector<1x128xf32> to vector<2x128xf32>
    %14 = arith.addf %11, %13 : vector<2x128xf32>
    %cst_11 = arith.constant 0.000000e+00 : f32
    %15 = vector.broadcast %cst_11 : f32 to vector<2x128xf32>
    %16 = arith.maximumf %14, %15 : vector<2x128xf32>
    %17 = arith.truncf %16 : vector<2x128xf32> to vector<2x128xbf16>
    %c0_12 = arith.constant 0 : index
    %c0_13 = arith.constant 0 : index
    %18 = vector.load %arg5[%c0_12, %c0_13] : memref<128x1xbf16, #tpu.memory_space<vmem>>, vector<128x1xbf16>
    %cst_14 = arith.constant dense<0.000000e+00> : vector<2x1xf32>
    %19 = tpu.matmul %17, %18, %cst_14 {dimension_numbers = #tpu.dot_dimension_numbers<[1], [0], [0], [1], [0, 0, 1, 1], [], []>} : vector<2x128xbf16>, vector<128x1xbf16>, vector<2x1xf32> -> vector<2x1xf32>
    %c0_15 = arith.constant 0 : index
    %c0_16 = arith.constant 0 : index
    %20 = vector.load %arg6[%c0_15, %c0_16] : memref<1x1xf32, #tpu.memory_space<vmem>>, vector<1x1xf32>
    %21 = vector.broadcast %20 : vector<1x1xf32> to vector<2x1xf32>
    %22 = arith.addf %19, %21 : vector<2x1xf32>
    %c0_17 = arith.constant 0 : index
    %c0_18 = arith.constant 0 : index
    %23 = vector.load %arg7[%c0_17, %c0_18] : memref<2x1xf32, #tpu.memory_space<vmem>>, vector<2x1xf32>
    tpu.vector_store %arg7[%c0_17, %c0_18], %22 {strides = array<i32>} : memref<2x1xf32, #tpu.memory_space<vmem>>, vector<2x1xf32>,
    return
  }
}

</mosaic_0001>

<bundles_post_ra>
// kernel: cmrl_forward.4
= control target key start
LH: loop header
LB: loop body
LE: loop exit
PB: predicated region body
PF: predicated region fallthrough
CT: control target
= control target key end

     0   :  { %v323_v8 = vmov 0.0   ;;  %vm324_vm0 = vmmov 0   ;;  %v325_v9 = vmov 0   ;;  %vm145_vm11 = vcmask 130048   ;;  %s430_s1 = inlined_call_operand.vmem [shape: f32[16,128], index: 1, kind: input, shape index: {}]   ;;  %s431_s0 = inlined_call_operand.vmem [shape: f32[16,128], index: 0, kind: input, shape index: {}]   ;;  %s432_s2 = inlined_call_operand.vmem [shape: s32[16,1], index: 2, kind: input, shape index: {}]   ;;  %s433_s5 = inlined_call_operand.vmem [shape: f32[16,256], index: 5, kind: output, shape index: {1}]   ;;  %s434_s4 = inlined_call_operand.vmem [shape: f32[16,256], index: 4, kind: output, shape index: {0}]   ;;  %s435_s3 = inlined_call_operand.vmem [shape: s32[1,16], index: 3, kind: input, shape index: {}]  }
   0x1   :  { %v359_v0 = vld [vmem:[%s430_s1] sm:$0xff]  ;;  %v369_v2 = vld [vmem:[%s430_s1 + $0x8] sm:$0xff]  ;;  %284 = vmatprep.subr.bf16.mxu0 %v323_v8  ;;  %290 = vmatprep.subr.bf16.mxu1 %v323_v8 }
   0x2   :  { %v364_v1 = vld [vmem:[%s431_s0] sm:$0xff]  ;;  %v50_v3 = vmul.f32 %v359_v0, %v359_v0  ;;  %v378_v5 = vld [vmem:[%s431_s0 + $0x8] sm:$0xff]  ;;  %v51_v6 = vmul.f32 %v369_v2, %v369_v2  ;;  %286 = vmatprep.mubr.msk.bf16.mxu0 %vm324_vm0, %v323_v8  ;;  %292 = vmatprep.mubr.msk.bf16.mxu1 %vm324_vm0, %v323_v8 }
   0x3   :  { %v22_v4 = vmul.f32 %v364_v1, %v364_v1  ;;  %v23_v7 = vmul.f32 %v378_v5, %v378_v5  ;;  %305 = vset.pattern.permute.xlu0 %v325_v9  ;;  %v119_v10 = vld [vmem:[%s432_s2] sm:$0xff]  ;;  %306 = vset.pattern.permute.xlu1 %v325_v9  ;;  %v120_v11 = vld [vmem:[%s432_s2 + $0x8] sm:$0xff] }
   0x4   :  { %52 = vadd.xlane.f32.xlu0 %v50_v3  ;;  %v275_v50 = vld [vmem:[%s435_s3] ss:$0 sm:$0xff] }
   0x5   :  { %24 = vadd.xlane.f32.xlu1 %v22_v4 }
   0x8   :  { %54 = vadd.xlane.f32.xlu0 %v51_v6 }
   0x9   :  { %26 = vadd.xlane.f32.xlu1 %v23_v7 }
  0x1a   :  { %126 = vperm.xlu1 %306, %v120_v11  }
  0x1e   :  { %123 = vperm.xlu0 %305, %v119_v10  }
  0x91   :  { %v53_v12 = vpop.xlane.xlu0 %52 }
  0x92   :  { %v25_v13 = vpop.xlane.xlu1 %24  ;;  %307 = vrsqrt.f32 %v53_v12  ;;  %vm58_vm1 = vcmp.eq.f32.partialorder %v53_v12, inf  ;;  %v61_v19 = vand.u32 2147483648, %v53_v12  ;;  %vm60_vm2 = vcmp.eq.f32.partialorder %v53_v12, 0.0 }
  0x93   :  { %309 = vrsqrt.f32 %v25_v13  ;;  %vm30_vm3 = vcmp.eq.f32.partialorder %v25_v13, inf  ;;  %v33_v22 = vand.u32 2147483648, %v25_v13  ;;  %vm32_vm4 = vcmp.eq.f32.partialorder %v25_v13, 0.0 }
  0x95   :  { %v55_v14 = vpop.xlane.xlu0 %54 }
  0x96   :  { %v27_v15 = vpop.xlane.xlu1 %26  ;;  %311 = vrsqrt.f32 %v55_v14  ;;  %vm65_vm5 = vcmp.eq.f32.partialorder %v55_v14, inf  ;;  %vm67_vm6 = vcmp.eq.f32.partialorder %v55_v14, 0.0  ;;  %v68_v31 = vand.u32 2147483648, %v55_v14 }
  0x97   :  { %313 = vrsqrt.f32 %v27_v15  ;;  %vm37_vm7 = vcmp.eq.f32.partialorder %v27_v15, inf  ;;  %v40_v34 = vand.u32 2147483648, %v27_v15  ;;  %vm39_vm8 = vcmp.eq.f32.partialorder %v27_v15, 0.0 }
  0x9a   :  { %v127_v52 = vpop.permute.xlu1 %126 }
  0x9b   :  { %vm133_vm10 = vcmp.eq.s32.totalorder %v127_v52, %v275_v50 }
  0x9c   :  { %v308_v16 = vpop.eup %307 }
  0x9d   :  { %v310_v17 = vpop.eup %309  ;;  %v57_v18 = vmul.f32 %v308_v16, %v53_v12  ;;  %v124_v51 = vpop.permute.xlu0 %123 }
  0x9e   :  { %v29_v20 = vmul.f32 %v310_v17, %v25_v13  ;;  %vm132_vm9 = vcmp.eq.s32.totalorder %v124_v51, %v275_v50 }
  0x9f   :  { %v59_v21 = vsel %vm58_vm1, %v53_v12, %v57_v18 }
  0xa0   :  { %v312_v23 = vpop.eup %311  ;;  %v62_v24 = vsel %vm60_vm2, %v61_v19, %v59_v21  ;;  %v31_v25 = vsel %vm30_vm3, %v25_v13, %v29_v20 }
  0xa1   :  { %v314_v26 = vpop.eup %313  ;;  %v70_v27 = vmax.f32 %v62_v24, 1e-12  ;;  %v34_v28 = vsel %vm32_vm4, %v33_v22, %v31_v25  ;;  %v64_v29 = vmul.f32 %v312_v23, %v55_v14 }
  0xa2   :  { %v42_v30 = vmax.f32 %v34_v28, 1e-12  ;;  %v36_v32 = vmul.f32 %v314_v26, %v27_v15 }
  0xa3   :  { %v66_v33 = vsel %vm65_vm5, %v55_v14, %v64_v29  ;;  %315 = vrcp.f32 %v70_v27 }
  0xa4   :  { %317 = vrcp.f32 %v42_v30  ;;  %v69_v35 = vsel %vm67_vm6, %v68_v31, %v66_v33  ;;  %v38_v36 = vsel %vm37_vm7, %v27_v15, %v36_v32 }
  0xa5   :  { %v71_v37 = vmax.f32 %v69_v35, 1e-12  ;;  %v41_v38 = vsel %vm39_vm8, %v40_v34, %v38_v36 }
  0xa6   :  { %v43_v39 = vmax.f32 %v41_v38, 1e-12 }
  0xa7   :  { %319 = vrcp.f32 %v71_v37 }
  0xa8   :  { %321 = vrcp.f32 %v43_v39 }
  0xad   :  { %v316_v40 = vpop.eup %315 }
  0xae   :  { %v318_v41 = vpop.eup %317  ;;  %v73_v42 = vmul.f32 %v316_v40, %v359_v0 }
  0xaf   :  { %v45_v43 = vmul.f32 %v318_v41, %v364_v1 }
  0xb0   :  { %254 = vst [vmem:[%s433_s5] sm:$0xff] %v73_v42 }
  0xb1   :  { %v320_v44 = vpop.eup %319  ;;  %261 = vst [vmem:[%s434_s4] sm:$0xff] %v45_v43 }
  0xb2   :  { %v322_v45 = vpop.eup %321  ;;  %v75_v46 = vmul.f32 %v320_v44, %v369_v2 }
  0xb3   :  { %v47_v47 = vmul.f32 %v322_v45, %v378_v5 }
  0xb4   :  { %v77_v48 = vpack.c.bf16 %v75_v46, %v73_v42  ;;  %255 = vst [vmem:[%s433_s5 + $0x10] sm:$0xff] %v75_v46 }
  0xb5   :  { %262 = vst [vmem:[%s434_s4 + $0x10] sm:$0xff] %v47_v47  ;;  %v76_v49 = vpack.c.bf16 %v47_v47, %v45_v43 }
  0xb6   :  { %285 = vmatpush3.bf16.xpose.msra.mxu0 %v77_v48  ;;  %291 = vmatpush3.bf16.msra.mxu1 %v77_v48 }
  0xb7   :  { %296 = vmatprep.subr.bf16.mxu1 %v323_v8 }
  0xbd   :  { %287 = vmatmul.mubr.bf16.vlgmr.msra.gmra.mrb[0].mxu0 %v76_v49 }
 0x190   :  { %v112_v53 = vpop.f32.mrb[0].mxu0 }
 0x191   :  { %v288_v54 = vpop.f32.mrb[1].mxu0  ;;  %v134_v56 = vsel %vm132_vm9, %v112_v53, 0.0 }
 0x192   :  { %v115_v55 = vpop.f32.mrb[2].mxu0 }
 0x193   :  { %v135_v57 = vsel %vm133_vm10, %v115_v55, 0.0  ;;  %v289_v58 = vpop.f32.mrb[3].mxu0 }
 0x194   :  { %v136_v59 = vpack.c.bf16 %v135_v57, %v134_v56 }
 0x196   :  { %194 = vxpose.xlu1.c.b16.start.end [1/1] (short) (narrow) %v136_v59, 16  ;;  %293 = vmatmul.mubr.msk.bf16.vlgmr.msra.gmra.mrb[0].mxu1 %vm145_vm11, %v136_v59 }
 0x197   :  { %297 = vmatpush3.bf16.msra.mxu1 %v76_v49  ;;  %298 = vmatprep.mubr.msk.bf16.mxu1 %vm324_vm0, %v323_v8 }
 0x1fc   :  { %v202_v60 = vpop.trf.xlu1 }
 0x1fd   :  { %299 = vmatmul.mubr.msk.bf16.vlgmr.msra.gmra.mrb[4].mxu1 %vm145_vm11, %v202_v60 }
 0x269   :  { %v183_v61 = vpop.f32.mrb[0].mxu1 }
 0x26a   :  { %265 = vst [vmem:[%s434_s4 + $0x8] sm:$0xff] %v183_v61  ;;  %v294_v62 = vpop.f32.mrb[1].mxu1 }
 0x26b   :  { %v186_v63 = vpop.f32.mrb[2].mxu1 }
 0x26c   :  { %266 = vst [vmem:[%s434_s4 + $0x18] sm:$0xff] %v186_v63  ;;  %v295_v0 = vpop.f32.mrb[3].mxu1 }
 0x2d0   :  { %v247_v1 = vpop.f32.mrb[4].mxu1 }
 0x2d1   :  { %256 = vst [vmem:[%s433_s5 + $0x8] sm:$0xff] %v247_v1  ;;  %v300_v2 = vpop.f32.mrb[5].mxu1 }
 0x2d2   :  { %v250_v3 = vpop.f32.mrb[6].mxu1 }
 0x2d3   :  { %257 = vst [vmem:[%s433_s5 + $0x18] sm:$0xff] %v250_v3  ;;  %v301_v4 = vpop.f32.mrb[7].mxu1 }

// kernel: cmrl_forward.3
= control target key start
LH: loop header
LB: loop body
LE: loop exit
PB: predicated region body
PF: predicated region fallthrough
CT: control target
= control target key end

     0   :  { %s1530_s24 = smov 0   ;;  %s1779_s0 = inlined_call_operand.vmem [shape: f32[2,16,128], index: 0, kind: input, shape index: {}]   ;;  %s1780_s1 = inlined_call_operand.vmem [shape: bf16[2,16,16], index: 1, kind: input, shape index: {}]   ;;  %s1781_s2 = inlined_call_operand.vmem [shape: bf16[2,128,128], index: 2, kind: input, shape index: {}]   ;;  %s1782_s3 = inlined_call_operand.vmem [shape: f32[2,1,128], index: 3, kind: input, shape index: {}]   ;;  %s1783_s4 = inlined_call_operand.vmem [shape: bf16[2,128,128], index: 4, kind: input, shape index: {}]   ;;  %s1784_s5 = inlined_call_operand.vmem [shape: bf16[2,128,128], index: 5, kind: input, shape index: {}]   ;;  %s1785_s6 = inlined_call_operand.vmem [shape: f32[2,1,128], index: 6, kind: input, shape index: {}]   ;;  %s1786_s7 = inlined_call_operand.vmem [shape: f32[2,16,128], index: 7, kind: output, shape index: {}]  }
   0x1 LB: > { %s1163_s25 = sadd.s32 4294967295, %s1486_s24   ;;  %p1167_p0 = scmp.ge.s32.totalorder %s1486_s24, 1  ;;  %s1486_s24 = sphi %s1530_s24, %s17_s24  }
   0x2   : > { %p293_p1 = scmp.lt.s32.totalorder %s1486_s24, 3 }
   0x4   : > { %p294_p2 = pnand %p1167_p0, %p293_p1 }
   0x5   : > { %p351_p3 = scmp.lt.s32.totalorder (!%p294_p2), %s1163_s25, 1  ;;  %v1488_v0 = vmov (!%p294_p2), 0.0   ;;  %vm1489_vm0 = vmmov (!%p294_p2), 0   ;;  %vm513_vm1 = vcmask (!%p294_p2), 130048  }
   0x6   : > { %297 = sbr.rel (%p294_p2) target bundleno = 1592 (0x638), region = 48  ;;  %1287 = vmatprep.subr.bf16.mxu0 (!%p294_p2), %v1488_v0  ;;  %1303 = vmatprep.mubr.msk.bf16.mxu0 (!%p294_p2), %vm1489_vm0, %v1488_v0 }
   0x7   : > { %1307 = vmatprep.subr.bf16.mxu1 (!%p294_p2), %v1488_v0  ;;  %1309 = vmatprep.mubr.msk.bf16.mxu1 (!%p294_p2), %vm1489_vm0, %v1488_v0 }
   0xd   : > { %s1788_s25 = smov (!%p351_p3, %s1163_s25), 1 }
   0xe   : > { %s1214_s26 = sshll.u32 %s1788_s25, 6  ;;  %s1212_s13 = sshll.u32 %s1788_s25, 4 }
   0xf   : > { %s365_s29 = scalar_lea.vmem %s1781_s2, %s1214_s26  ;;  %s1555_s9 = scalar_lea.vmem %s1784_s5, %s1214_s26 }
  0x10   : > { %v1455_v1 = vld [vmem:[%s365_s29] sm:$0xff]   ;;  %v1456_v2 = vld [vmem:[%s365_s29 + $0x8] sm:$0xff]   ;;  %v1457_v3 = vld [vmem:[%s365_s29 + $0x10] sm:$0xff]   ;;  %s1561_s12 = scalar_lea.vmem %s1783_s4, %s1214_s26  ;;  %s355_s16 = scalar_lea.vmem %s1779_s0, %s1212_s13 }
  0x11   : > { %1288 = vmatpush3.bf16.msra.mxu0 %v1455_v1  ;;  %v1458_v4 = vld [vmem:[%s365_s29 + $0x18] sm:$0xff]   ;;  %v1459_v5 = vld [vmem:[%s365_s29 + $0x20] sm:$0xff]   ;;  %v1460_v6 = vld [vmem:[%s365_s29 + $0x28] sm:$0xff]   ;;  %s1213_s17 = sshll.u32 %s1788_s25, 3  ;;  %s368_s23 = scalar_lea.vmem %s1782_s3, %s1788_s25 }
  0x12   : > { %1289 = vmatprep.subr.bf16.mxu0 %v1488_v0  ;;  %v1461_v7 = vld [vmem:[%s365_s29 + $0x30] sm:$0xff]   ;;  %v1462_v8 = vld [vmem:[%s365_s29 + $0x38] sm:$0xff]   ;;  %v1572_v9 = vld [vmem:[%s355_s16] sm:$0xff]  ;;  %s360_s20 = scalar_lea.vmem %s1780_s1, %s1213_s17  ;;  %s381_s28 = scalar_lea.vmem %s1785_s6, %s1788_s25 }
  0x13   : > { %v1574_v10 = vld [vmem:[%s355_s16 + $0x8] sm:$0xff]  ;;  %v1587_v12 = vld [vmem:[%s1561_s12] sm:$0xff]   ;;  %v1596_v14 = vld [vmem:[%s1561_s12 + $0x10] sm:$0xff]   ;;  %s386_s8 = scalar_lea.vmem %s1786_s7, %s1212_s13 }
  0x14   : > { %v392_v11 = vpack.c.bf16 %v1574_v10, %v1572_v9  ;;  %v1591_v13 = vld [vmem:[%s1561_s12 + $0x8] sm:$0xff]   ;;  %v1601_v15 = vld [vmem:[%s1561_s12 + $0x18] sm:$0xff]   ;;  %v1606_v16 = vld [vmem:[%s1561_s12 + $0x20] sm:$0xff]  }
  0x15   : > { %1290 = vmatpush3.bf16.msra.mxu0 %v1456_v2  ;;  %v1611_v17 = vld [vmem:[%s1561_s12 + $0x28] sm:$0xff]   ;;  %v1180_v18 = vld [vmem:[%s368_s23] ss:$0 sm:$0xff]  ;;  %v1637_v31 = vld [vmem:[%s1555_s9 + $0x10] sm:$0xff]  }
  0x16   : > { %1291 = vmatprep.subr.bf16.mxu0 %v1488_v0  ;;  %v1620_v28 = vld [vmem:[%s360_s20] sm:$0xff]   ;;  %v1630_v30 = vld [vmem:[%s1555_s9 + $0x8] sm:$0xff]   ;;  %v1642_v32 = vld [vmem:[%s1555_s9 + $0x18] sm:$0xff]  }
  0x17   : > { %v1623_v29 = vld [vmem:[%s1555_s9] sm:$0xff]   ;;  %v1652_v34 = vld [vmem:[%s1555_s9 + $0x28] sm:$0xff]   ;;  %v1657_v35 = vld [vmem:[%s1555_s9 + $0x30] sm:$0xff]  }
  0x18   : > { %v1647_v33 = vld [vmem:[%s1555_s9 + $0x20] sm:$0xff]   ;;  %v1662_v36 = vld [vmem:[%s1555_s9 + $0x38] sm:$0xff]   ;;  %v1670_v37 = vld [vmem:[%s1561_s12 + $0x30] sm:$0xff]  }
  0x19   : > { %1292 = vmatpush3.bf16.msra.mxu0 %v1457_v3  ;;  %v1675_v38 = vld [vmem:[%s1561_s12 + $0x38] sm:$0xff]   ;;  %v1701_v53 = vld [vmem:[%s381_s28] ss:$0 sm:$0xff] }
  0x1a   : > { %1293 = vmatprep.subr.bf16.mxu0 %v1488_v0 }
  0x1d   : > { %1294 = vmatpush3.bf16.msra.mxu0 %v1458_v4 }
  0x1e   : > { %1295 = vmatprep.subr.bf16.mxu0 %v1488_v0 }
  0x21   : > { %1296 = vmatpush3.bf16.msra.mxu0 %v1459_v5 }
  0x22   : > { %1297 = vmatprep.subr.bf16.mxu0 %v1488_v0 }
  0x25   : > { %1298 = vmatpush3.bf16.msra.mxu0 %v1460_v6 }
  0x26   : > { %1299 = vmatprep.subr.bf16.mxu0 %v1488_v0 }
  0x29   : > { %1300 = vmatpush3.bf16.msra.mxu0 %v1461_v7 }
  0x2a   : > { %1301 = vmatprep.subr.bf16.mxu0 %v1488_v0 }
  0x2d   : > { %1302 = vmatpush3.bf16.msra.mxu0 %v1462_v8 }
  0x2e   : > { %1333 = vmatprep.subr.bf16.mxu0 %v1488_v0 }
  0x30   : > { %1304 = vmatmul.mubr.bf16.vlgmr.msra.gmra.mrb[0].mxu0 %v392_v11 }
  0x31   : > { %1349 = vmatprep.mubr.msk.bf16.mxu0 %vm1489_vm0, %v1488_v0  ;;  %1334 = vmatpush3.bf16.msra.mxu0 %v1587_v12 }
  0x32   : > { %1335 = vmatprep.subr.bf16.mxu0 %v1488_v0 }
  0x35   : > { %1336 = vmatpush3.bf16.msra.mxu0 %v1591_v13 }
  0x36   : > { %1337 = vmatprep.subr.bf16.mxu0 %v1488_v0 }
  0x39   : > { %1338 = vmatpush3.bf16.msra.mxu0 %v1596_v14 }
  0x3a   : > { %1339 = vmatprep.subr.bf16.mxu0 %v1488_v0 }
  0x3d   : > { %1340 = vmatpush3.bf16.msra.mxu0 %v1601_v15 }
  0x3e   : > { %1341 = vmatprep.subr.bf16.mxu0 %v1488_v0 }
  0x41   : > { %1342 = vmatpush3.bf16.msra.mxu0 %v1606_v16 }
  0x42   : > { %1343 = vmatprep.subr.bf16.mxu0 %v1488_v0 }
  0x45   : > { %1344 = vmatpush3.bf16.msra.mxu0 %v1611_v17 }
  0x46   : > { %1345 = vmatprep.subr.bf16.mxu0 %v1488_v0 }
  0x49   : > { %1346 = vmatpush3.bf16.msra.mxu0 %v1670_v37 }
  0x4a   : > { %1347 = vmatprep.subr.bf16.mxu0 %v1488_v0 }
  0x4d   : > { %1348 = vmatpush3.bf16.msra.mxu0 %v1675_v38 }
  0x4e   : > { %1379 = vmatprep.subr.bf16.mxu0 %v1488_v0 }
 0x103   : > { %v498_v19 = vpop.f32.mrb[0].mxu0 }
 0x104   : > { %v499_v20 = vadd.f32 %v1180_v18, %v498_v19  ;;  %v1305_v21 = vpop.f32.mrb[1].mxu0 }
 0x105   : > { %v501_v22 = vpop.f32.mrb[2].mxu0 }
 0x106   : > { %v502_v23 = vadd.f32 %v1180_v18, %v501_v22  ;;  %v1306_v24 = vpop.f32.mrb[3].mxu0  ;;  %v505_v25 = vmax.f32 %v499_v20, 0.0 }
 0x108   : > { %v506_v26 = vmax.f32 %v502_v23, 0.0 }
 0x10a   : > { %v507_v27 = vpack.c.bf16 %v506_v26, %v505_v25 }
 0x10c   : > { %1308 = vmatpush3.bf16.msra.mxu1 %v507_v27 }
 0x10d   : > { %1313 = vmatprep.subr.bf16.mxu1 %v1488_v0 }
 0x10f   : > { %1310 = vmatmul.mubr.msk.bf16.vlgmr.msra.gmra.mrb[0].mxu1 %vm513_vm1, %v1620_v28 }
 0x110   : > { %1314 = vmatpush3.bf16.msra.mxu1 %v1623_v29  ;;  %1329 = vmatprep.mubr.msk.bf16.mxu1 %vm1489_vm0, %v1488_v0 }
 0x111   : > { %1315 = vmatprep.subr.bf16.mxu1 %v1488_v0 }
 0x114   : > { %1316 = vmatpush3.bf16.msra.mxu1 %v1630_v30 }
 0x115   : > { %1317 = vmatprep.subr.bf16.mxu1 %v1488_v0 }
 0x118   : > { %1318 = vmatpush3.bf16.msra.mxu1 %v1637_v31 }
 0x119   : > { %1319 = vmatprep.subr.bf16.mxu1 %v1488_v0 }
 0x11c   : > { %1320 = vmatpush3.bf16.msra.mxu1 %v1642_v32 }
 0x11d   : > { %1321 = vmatprep.subr.bf16.mxu1 %v1488_v0 }
 0x120   : > { %1322 = vmatpush3.bf16.msra.mxu1 %v1647_v33 }
 0x121   : > { %1323 = vmatprep.subr.bf16.mxu1 %v1488_v0 }
 0x124   : > { %1324 = vmatpush3.bf16.msra.mxu1 %v1652_v34 }
 0x125   : > { %1325 = vmatprep.subr.bf16.mxu1 %v1488_v0 }
 0x128   : > { %1326 = vmatpush3.bf16.msra.mxu1 %v1657_v35 }
 0x129   : > { %1327 = vmatprep.subr.bf16.mxu1 %v1488_v0 }
 0x12c   : > { %1328 = vmatpush3.bf16.msra.mxu1 %v1662_v36 }
 0x12d   : > { %1353 = vmatprep.subr.bf16.mxu1 %v1488_v0 }
 0x12f   : > { %1330 = vmatmul.mubr.bf16.vlgmr.msra.gmra.mrb[4].mxu1 %v507_v27 }
 0x130   : > { %1355 = vmatprep.mubr.msk.bf16.mxu1 %vm1489_vm0, %v1488_v0 }
 0x1e2   : > { %v551_v39 = vpop.f32.mrb[0].mxu1 }
 0x1e3   : > { %v1311_v40 = vpop.f32.mrb[1].mxu1  ;;  %v558_v42 = vmax.f32 %v551_v39, 0.0 }
 0x1e4   : > { %v554_v41 = vpop.f32.mrb[2].mxu1 }
 0x1e5   : > { %v559_v43 = vmax.f32 %v554_v41, 0.0  ;;  %v1312_v44 = vpop.f32.mrb[3].mxu1 }
 0x1e7   : > { %v560_v45 = vpack.c.bf16 %v559_v43, %v558_v42 }
 0x1e9   : > { %1350 = vmatmul.mubr.bf16.vlgmr.msra.gmra.mrb[4].mxu0 %v560_v45 }
 0x1ea   : > { %1380 = vmatpush3.bf16.msra.mxu0 %v1587_v12  ;;  %1395 = vmatprep.mubr.msk.bf16.mxu0 %vm1489_vm0, %v1488_v0 }
 0x1eb   : > { %1381 = vmatprep.subr.bf16.mxu0 %v1488_v0 }
 0x1ee   : > { %1382 = vmatpush3.bf16.msra.mxu0 %v1591_v13 }
 0x1ef   : > { %1383 = vmatprep.subr.bf16.mxu0 %v1488_v0 }
 0x1f2   : > { %1384 = vmatpush3.bf16.msra.mxu0 %v1596_v14 }
 0x1f3   : > { %1385 = vmatprep.subr.bf16.mxu0 %v1488_v0 }
 0x1f6   : > { %1386 = vmatpush3.bf16.msra.mxu0 %v1601_v15 }
 0x1f7   : > { %1387 = vmatprep.subr.bf16.mxu0 %v1488_v0 }
 0x1fa   : > { %1388 = vmatpush3.bf16.msra.mxu0 %v1606_v16 }
 0x1fb   : > { %1389 = vmatprep.subr.bf16.mxu0 %v1488_v0 }
 0x1fe   : > { %1390 = vmatpush3.bf16.msra.mxu0 %v1611_v17 }
 0x1ff   : > { %1391 = vmatprep.subr.bf16.mxu0 %v1488_v0 }
 0x202   : > { %v675_v46 = vpop.f32.mrb[4].mxu1  ;;  %1392 = vmatpush3.bf16.msra.mxu0 %v1670_v37 }
 0x203   : > { %v1331_v47 = vpop.f32.mrb[5].mxu1  ;;  %1393 = vmatprep.subr.bf16.mxu0 %v1488_v0 }
 0x204   : > { %v678_v48 = vpop.f32.mrb[6].mxu1 }
 0x205   : > { %v1332_v49 = vpop.f32.mrb[7].mxu1 }
 0x206   : > { %1394 = vmatpush3.bf16.msra.mxu0 %v1675_v38 }
 0x207   : > { %1425 = vmatprep.subr.bf16.mxu0 %v1488_v0 }
 0x2bc   : > { %v764_v50 = vpop.f32.mrb[4].mxu0 }
 0x2bd   : > { %v765_v51 = vadd.f32 %v764_v50, %v675_v46  ;;  %v1351_v52 = vpop.f32.mrb[5].mxu0 }
 0x2be   : > { %v767_v54 = vpop.f32.mrb[6].mxu0 }
 0x2bf   : > { %v768_v55 = vadd.f32 %v767_v54, %v678_v48  ;;  %v1352_v56 = vpop.f32.mrb[7].mxu0  ;;  %v778_v57 = vadd.f32 %v1701_v53, %v765_v51 }
 0x2c1   : > { %v779_v58 = vadd.f32 %v1701_v53, %v768_v55 }
 0x2c3   : > { %v780_v59 = vpack.c.bf16 %v779_v58, %v778_v57 }
 0x2c5   : > { %1354 = vmatpush3.bf16.msra.mxu1 %v780_v59 }
 0x2c6   : > { %1359 = vmatprep.subr.bf16.mxu1 %v1488_v0 }
 0x2c8   : > { %1356 = vmatmul.mubr.msk.bf16.vlgmr.msra.gmra.mrb[8].mxu1 %vm513_vm1, %v1620_v28 }
 0x2c9   : > { %1360 = vmatpush3.bf16.msra.mxu1 %v1623_v29  ;;  %1375 = vmatprep.mubr.msk.bf16.mxu1 %vm1489_vm0, %v1488_v0 }
 0x2ca   : > { %1361 = vmatprep.subr.bf16.mxu1 %v1488_v0 }
 0x2cd   : > { %1362 = vmatpush3.bf16.msra.mxu1 %v1630_v30 }
 0x2ce   : > { %1363 = vmatprep.subr.bf16.mxu1 %v1488_v0 }
 0x2d1   : > { %1364 = vmatpush3.bf16.msra.mxu1 %v1637_v31 }
 0x2d2   : > { %1365 = vmatprep.subr.bf16.mxu1 %v1488_v0 }
 0x2d5   : > { %1366 = vmatpush3.bf16.msra.mxu1 %v1642_v32 }
 0x2d6   : > { %1367 = vmatprep.subr.bf16.mxu1 %v1488_v0 }
 0x2d9   : > { %1368 = vmatpush3.bf16.msra.mxu1 %v1647_v33 }
 0x2da   : > { %1369 = vmatprep.subr.bf16.mxu1 %v1488_v0 }
 0x2dd   : > { %1370 = vmatpush3.bf16.msra.mxu1 %v1652_v34 }
 0x2de   : > { %1371 = vmatprep.subr.bf16.mxu1 %v1488_v0 }
 0x2e1   : > { %1372 = vmatpush3.bf16.msra.mxu1 %v1657_v35 }
 0x2e2   : > { %1373 = vmatprep.subr.bf16.mxu1 %v1488_v0 }
 0x2e5   : > { %1374 = vmatpush3.bf16.msra.mxu1 %v1662_v36 }
 0x2e6   : > { %1399 = vmatprep.subr.bf16.mxu1 %v1488_v0 }
 0x2e8   : > { %1376 = vmatmul.mubr.bf16.vlgmr.msra.gmra.mrb[12].mxu1 %v780_v59 }
 0x2e9   : > { %1401 = vmatprep.mubr.msk.bf16.mxu1 %vm1489_vm0, %v1488_v0 }
 0x39b   : > { %v815_v60 = vpop.f32.mrb[8].mxu1 }
 0x39c   : > { %v1357_v61 = vpop.f32.mrb[9].mxu1  ;;  %v822_v63 = vmax.f32 %v815_v60, 0.0 }
 0x39d   : > { %v818_v62 = vpop.f32.mrb[10].mxu1 }
 0x39e   : > { %v823_v1 = vmax.f32 %v818_v62, 0.0  ;;  %v1358_v2 = vpop.f32.mrb[11].mxu1 }
 0x3a0   : > { %v824_v3 = vpack.c.bf16 %v823_v1, %v822_v63 }
 0x3a2   : > { %1396 = vmatmul.mubr.bf16.vlgmr.msra.gmra.mrb[8].mxu0 %v824_v3 }
 0x3a3   : > { %1426 = vmatpush3.bf16.msra.mxu0 %v1587_v12  ;;  %1441 = vmatprep.mubr.msk.bf16.mxu0 %vm1489_vm0, %v1488_v0 }
 0x3a4   : > { %1427 = vmatprep.subr.bf16.mxu0 %v1488_v0 }
 0x3a7   : > { %1428 = vmatpush3.bf16.msra.mxu0 %v1591_v13 }
 0x3a8   : > { %1429 = vmatprep.subr.bf16.mxu0 %v1488_v0 }
 0x3ab   : > { %1430 = vmatpush3.bf16.msra.mxu0 %v1596_v14 }
 0x3ac   : > { %1431 = vmatprep.subr.bf16.mxu0 %v1488_v0 }
 0x3af   : > { %1432 = vmatpush3.bf16.msra.mxu0 %v1601_v15 }
 0x3b0   : > { %1433 = vmatprep.subr.bf16.mxu0 %v1488_v0 }
 0x3b3   : > { %1434 = vmatpush3.bf16.msra.mxu0 %v1606_v16 }
 0x3b4   : > { %1435 = vmatprep.subr.bf16.mxu0 %v1488_v0 }
 0x3b7   : > { %1436 = vmatpush3.bf16.msra.mxu0 %v1611_v17 }
 0x3b8   : > { %1437 = vmatprep.subr.bf16.mxu0 %v1488_v0 }
 0x3bb   : > { %v859_v4 = vpop.f32.mrb[12].mxu1  ;;  %1438 = vmatpush3.bf16.msra.mxu0 %v1670_v37 }
 0x3bc   : > { %v1377_v5 = vpop.f32.mrb[13].mxu1  ;;  %1439 = vmatprep.subr.bf16.mxu0 %v1488_v0 }
 0x3bd   : > { %v862_v6 = vpop.f32.mrb[14].mxu1 }
 0x3be   : > { %v1378_v7 = vpop.f32.mrb[15].mxu1 }
 0x3bf   : > { %1440 = vmatpush3.bf16.msra.mxu0 %v1675_v38 }
 0x475   : > { %v900_v8 = vpop.f32.mrb[8].mxu0 }
 0x476   : > { %v901_v11 = vadd.f32 %v900_v8, %v859_v4  ;;  %v1397_v12 = vpop.f32.mrb[9].mxu0 }
 0x477   : > { %v903_v13 = vpop.f32.mrb[10].mxu0 }
 0x478   : > { %v904_v14 = vadd.f32 %v903_v13, %v862_v6  ;;  %v1398_v15 = vpop.f32.mrb[11].mxu0  ;;  %v907_v16 = vadd.f32 %v1701_v53, %v901_v11 }
 0x47a   : > { %v908_v17 = vadd.f32 %v1701_v53, %v904_v14 }
 0x47c   : > { %v909_v18 = vpack.c.bf16 %v908_v17, %v907_v16 }
 0x47e   : > { %1400 = vmatpush3.bf16.msra.mxu1 %v909_v18 }
 0x47f   : > { %1405 = vmatprep.subr.bf16.mxu1 %v1488_v0 }
 0x481   : > { %1402 = vmatmul.mubr.msk.bf16.vlgmr.msra.gmra.mrb[16].mxu1 %vm513_vm1, %v1620_v28 }
 0x482   : > { %1406 = vmatpush3.bf16.msra.mxu1 %v1623_v29  ;;  %1421 = vmatprep.mubr.msk.bf16.mxu1 %vm1489_vm0, %v1488_v0 }
 0x483   : > { %1407 = vmatprep.subr.bf16.mxu1 %v1488_v0 }
 0x486   : > { %1408 = vmatpush3.bf16.msra.mxu1 %v1630_v30 }
 0x487   : > { %1409 = vmatprep.subr.bf16.mxu1 %v1488_v0 }
 0x48a   : > { %1410 = vmatpush3.bf16.msra.mxu1 %v1637_v31 }
 0x48b   : > { %1411 = vmatprep.subr.bf16.mxu1 %v1488_v0 }
 0x48e   : > { %1412 = vmatpush3.bf16.msra.mxu1 %v1642_v32 }
 0x48f   : > { %1413 = vmatprep.subr.bf16.mxu1 %v1488_v0 }
 0x492   : > { %1414 = vmatpush3.bf16.msra.mxu1 %v1647_v33 }
 0x493   : > { %1415 = vmatprep.subr.bf16.mxu1 %v1488_v0 }
 0x496   : > { %1416 = vmatpush3.bf16.msra.mxu1 %v1652_v34 }
 0x497   : > { %1417 = vmatprep.subr.bf16.mxu1 %v1488_v0 }
 0x49a   : > { %1418 = vmatpush3.bf16.msra.mxu1 %v1657_v35 }
 0x49b   : > { %1419 = vmatprep.subr.bf16.mxu1 %v1488_v0 }
 0x49e   : > { %1420 = vmatpush3.bf16.msra.mxu1 %v1662_v36 }
 0x4a1   : > { %1422 = vmatmul.mubr.bf16.vlgmr.msra.gmra.mrb[20].mxu1 %v909_v18 }
 0x554   : > { %v944_v19 = vpop.f32.mrb[16].mxu1 }
 0x555   : > { %v1403_v20 = vpop.f32.mrb[17].mxu1  ;;  %v951_v22 = vmax.f32 %v944_v19, 0.0 }
 0x556   : > { %v947_v21 = vpop.f32.mrb[18].mxu1 }
 0x557   : > { %v952_v23 = vmax.f32 %v947_v21, 0.0  ;;  %v1404_v24 = vpop.f32.mrb[19].mxu1 }
 0x559   : > { %v953_v25 = vpack.c.bf16 %v952_v23, %v951_v22 }
 0x55b   : > { %1442 = vmatmul.mubr.bf16.vlgmr.msra.gmra.mrb[12].mxu0 %v953_v25 }
 0x574   : > { %v988_v26 = vpop.f32.mrb[20].mxu1 }
 0x575   : > { %v1423_v27 = vpop.f32.mrb[21].mxu1 }
 0x576   : > { %v991_v28 = vpop.f32.mrb[22].mxu1 }
 0x577   : > { %v1424_v29 = vpop.f32.mrb[23].mxu1 }
 0x62e   : > { %v1029_v30 = vpop.f32.mrb[12].mxu0 }
 0x62f   : > { %v1030_v31 = vadd.f32 %v1029_v30, %v988_v26  ;;  %v1443_v32 = vpop.f32.mrb[13].mxu0 }
 0x630   : > { %v1032_v0 = vpop.f32.mrb[14].mxu0 }
 0x631   : > { %v1036_v33 = vadd.f32 %v1701_v53, %v1030_v31  ;;  %v1033_v34 = vadd.f32 %v1032_v0, %v991_v28  ;;  %v1444_v35 = vpop.f32.mrb[15].mxu0 }
 0x633   : > { %v1038_v36 = vadd.f32 %v1036_v33, %v1572_v9  ;;  %v1037_v37 = vadd.f32 %v1701_v53, %v1033_v34 }
 0x635   : > { %1040 = vst [vmem:[%s386_s8] sm:$0xff] %v1038_v36  ;;  %v1039_v38 = vadd.f32 %v1037_v37, %v1574_v10 }
 0x637   : > { %1041 = vst [vmem:[%s386_s8 + $0x8] sm:$0xff] %v1039_v38 }
 0x638 PF: > { %s17_s24 = sadd.s32 1, %s1486_s24  }
 0x639   : > { %p14_p4 = scmp.ge.s32.totalorder %s17_s24, 4  }
 0x63b   :  { %16 = sbr.rel (!%p14_p4) target bundleno = 1 (0x1), region = 96 }

// kernel: cmrl_forward.5
= control target key start
LH: loop header
LB: loop body
LE: loop exit
PB: predicated region body
PF: predicated region fallthrough
CT: control target
= control target key end

     0   :  { %v1006_v7 = vmov 1983009808   ;;  %v35_v9 = vlaneseq  ;;  %vm380_vm0 = vcmask 261120   ;;  %vm1008_vm1 = vmmov 0   ;;  %s1312_s1 = inlined_call_operand.vmem [shape: bf16[416,256], index: 1, kind: input, shape index: {}]   ;;  %s1313_s0 = inlined_call_operand.vmem [shape: f32[2,416], index: 0, kind: input, shape index: {}]   ;;  %s1314_s3 = inlined_call_operand.vmem [shape: bf16[256,128], index: 3, kind: input, shape index: {}]   ;;  %s1315_s5 = inlined_call_operand.vmem [shape: bf16[128,1], index: 5, kind: input, shape index: {}]   ;;  %s1316_s2 = inlined_call_operand.vmem [shape: f32[1,256], index: 2, kind: input, shape index: {}]   ;;  %s1317_s6 = inlined_call_operand.<no memory space> [shape: f32[1,1], index: 6, kind: input, shape index: {}]   ;;  %s1318_s4 = inlined_call_operand.vmem [shape: f32[1,128], index: 4, kind: input, shape index: {}]   ;;  %s1319_s7 = inlined_call_operand.vmem [shape: f32[2,1], index: 7, kind: output, shape index: {}]  }
   0x1   :  { %v903_v0 = vld [vmem:[%s1312_s1 + $0x4] ss:$8 sps:$4 sm:$0xff]   ;;  %v905_v1 = vld [vmem:[%s1312_s1] ss:$8 sps:$4 sm:$0xff]   ;;  %v906_v2 = vld [vmem:[%s1312_s1 + $0x14] ss:$8 sps:$4 sm:$0xff]   ;;  %v33_v8 = vunpack.c.l.s4 %v1006_v7 }
   0x2   :  { %384 = vmatprep.subr.bf16.mxu0 %v903_v0  ;;  %v908_v3 = vld [vmem:[%s1312_s1 + $0x10] ss:$8 sps:$4 sm:$0xff]   ;;  %v909_v4 = vld [vmem:[%s1312_s1 + $0x24] ss:$8 sps:$4 sm:$0xff]   ;;  %v911_v5 = vld [vmem:[%s1312_s1 + $0x20] ss:$8 sps:$4 sm:$0xff]  }
   0x3   :  { %385 = vmatpush1.bf16.msra.mxu0 %v905_v1  ;;  %v912_v6 = vld [vmem:[%s1312_s1 + $0x34] ss:$8 sps:$4 sm:$0xff]   ;;  %v914_v10 = vld [vmem:[%s1312_s1 + $0x30] ss:$8 sps:$4 sm:$0xff]   ;;  %v915_v11 = vld [vmem:[%s1312_s1 + $0x44] ss:$8 sps:$4 sm:$0xff]   ;;  %v34_v12 = vunpack.c.0.s8 %v33_v8 }
   0x4   :  { %386 = vmatprep.subr.bf16.mxu0 %v906_v2  ;;  %v1076_v13 = vshrl.u32 %v35_v9, 7  ;;  %v917_v14 = vld [vmem:[%s1312_s1 + $0x40] ss:$8 sps:$4 sm:$0xff]   ;;  %v918_v15 = vld [vmem:[%s1312_s1 + $0x54] ss:$8 sps:$4 sm:$0xff]   ;;  %vm758_vm2 = vcmask 1024  }
   0x5   :  { %v920_v17 = vld [vmem:[%s1312_s1 + $0x50] ss:$8 sps:$4 sm:$0xff]   ;;  %v921_v18 = vld [vmem:[%s1312_s1 + $0x64] ss:$8 sps:$4 sm:$0xff]   ;;  %v923_v21 = vld [vmem:[%s1312_s1 + $0x60] ss:$8 sps:$4 sm:$0xff]  }
   0x6   :  { %v1085_v16 = vsub.s32 %v34_v12, %v1076_v13  ;;  %v1096_v19 = vld [vmem:[%s1313_s0] sm:$0xff]  ;;  %v924_v22 = vld [vmem:[%s1312_s1 + $0x74] ss:$8 sps:$4 sm:$0xff]   ;;  %v926_v25 = vld [vmem:[%s1312_s1 + $0x70] ss:$8 sps:$4 sm:$0xff]  }
   0x7   :  { %387 = vmatpush1.bf16.msra.mxu0 %v908_v3  ;;  %v927_v26 = vld [vmem:[%s1312_s1 + $0x84] ss:$8 sps:$4 sm:$0xff]   ;;  %v929_v27 = vld [vmem:[%s1312_s1 + $0x80] ss:$8 sps:$4 sm:$0xff]   ;;  %v930_v28 = vld [vmem:[%s1312_s1 + $0x94] ss:$8 sps:$4 sm:$0xff]   ;;  %v31_v48 = vcombine.high %v1096_v19, %v1096_v19 }
   0x8   :  { %388 = vmatprep.subr.bf16.mxu0 %v909_v4  ;;  %v1100_v20 = vrot.slane %v1096_v19, %v1085_v16  ;;  %v932_v29 = vld [vmem:[%s1312_s1 + $0x90] ss:$8 sps:$4 sm:$0xff]   ;;  %v933_v30 = vld [vmem:[%s1312_s1 + $0xa4] ss:$8 sps:$4 sm:$0xff]   ;;  %v935_v33 = vld [vmem:[%s1312_s1 + $0xa0] ss:$8 sps:$4 sm:$0xff]  }
   0x9   :  { %v982_v31 = vld [vmem:[%s1314_s3 + $0x40] sm:$0xff]   ;;  %v984_v34 = vld [vmem:[%s1314_s3 + $0x48] sm:$0xff]   ;;  %v986_v36 = vld [vmem:[%s1314_s3 + $0x50] sm:$0xff]   ;;  %v45_v53 = vrot.slane %v31_v48, %v1085_v16 }
   0xa   :  { %v46_v23 = vcombine.high %v1100_v20, %v1100_v20  ;;  %v983_v32 = vld [vmem:[%s1314_s3] sm:$0xff]   ;;  %843 = vmatprep.subr.bf16.mxu1 %v982_v31  ;;  %v985_v35 = vld [vmem:[%s1314_s3 + $0x8] sm:$0xff]   ;;  %v936_v37 = vld [vmem:[%s1312_s1 + $0xb4] ss:$8 sps:$4 sm:$0xff]   ;;  %v52_v58 = vpack.c.bf16 %v1100_v20, %v1100_v20 }
   0xb   :  { %389 = vmatpush1.bf16.msra.mxu0 %v911_v5  ;;  %844 = vmatpush3.bf16.msra.mxu1 %v983_v32  ;;  %v938_v38 = vld [vmem:[%s1312_s1 + $0xb0] ss:$8 sps:$4 sm:$0xff]   ;;  %v939_v41 = vld [vmem:[%s1312_s1 + $0xc4] ss:$8 sps:$4 sm:$0xff]   ;;  %v941_v42 = vld [vmem:[%s1312_s1 + $0xc0] ss:$8 sps:$4 sm:$0xff]   ;;  %v47_v56 = vcombine.high %v45_v53, %v45_v53  ;;  %v54_v16 = vpack.c.bf16 %v45_v53, %v45_v53 }
   0xc   :  { %390 = vmatprep.subr.bf16.mxu0 %v912_v6  ;;  %v53_v24 = vpack.c.bf16 %v46_v23, %v46_v23  ;;  %845 = vmatprep.subr.bf16.mxu1 %v984_v34  ;;  %v987_v39 = vld [vmem:[%s1314_s3 + $0x10] sm:$0xff]   ;;  %v988_v40 = vld [vmem:[%s1314_s3 + $0x58] sm:$0xff]   ;;  %v990_v45 = vld [vmem:[%s1314_s3 + $0x60] sm:$0xff]  }
   0xd   :  { %v942_v43 = vld [vmem:[%s1312_s1 + $0xd4] ss:$8 sps:$4 sm:$0xff]   ;;  %v991_v46 = vld [vmem:[%s1314_s3 + $0x20] sm:$0xff]   ;;  %v944_v47 = vld [vmem:[%s1312_s1 + $0xd0] ss:$8 sps:$4 sm:$0xff]   ;;  %v55_v60 = vpack.c.bf16 %v47_v56, %v47_v56 }
   0xe   :  { %416 = vmatprep.mubr.bf16.mxu0 %v53_v24  ;;  %v989_v44 = vld [vmem:[%s1314_s3 + $0x18] sm:$0xff]   ;;  %v992_v49 = vld [vmem:[%s1314_s3 + $0x68] sm:$0xff]   ;;  %v108_v23 = vld [vmem:[%s1316_s2] sm:$0x3]  ;;  %v116_v24 = vsub.s32 1, %v1076_v13 }
   0xf   :  { %391 = vmatpush1.bf16.msra.mxu0 %v914_v10  ;;  %846 = vmatpush3.bf16.msra.mxu1 %v985_v35  ;;  %v945_v50 = vld [vmem:[%s1312_s1 + $0xe4] ss:$8 sps:$4 sm:$0xff]   ;;  %v947_v52 = vld [vmem:[%s1312_s1 + $0xe0] ss:$8 sps:$4 sm:$0xff]   ;;  %v948_v54 = vld [vmem:[%s1312_s1 + $0xf4] ss:$8 sps:$4 sm:$0xff]  }
  0x10   :  { %392 = vmatprep.subr.bf16.mxu0 %v915_v11  ;;  %847 = vmatprep.subr.bf16.mxu1 %v986_v36  ;;  %v993_v51 = vld [vmem:[%s1314_s3 + $0x28] sm:$0xff]   ;;  %v950_v55 = vld [vmem:[%s1312_s1 + $0xf0] ss:$8 sps:$4 sm:$0xff]   ;;  %v957_v61 = vld [vmem:[%s1312_s1 + $0x114] ss:$8 sps:$4 sm:$0xff]  }
  0x11   :  { %v954_v57 = vld [vmem:[%s1312_s1 + $0x104] ss:$8 sps:$4 sm:$0xff]   ;;  %v952_v59 = vld [vmem:[%s1312_s1 + $0x100] ss:$8 sps:$4 sm:$0xff]   ;;  %v955_v62 = vld [vmem:[%s1312_s1 + $0x110] ss:$8 sps:$4 sm:$0xff]  }
  0x12   :  { %v960_v63 = vld [vmem:[%s1312_s1 + $0x124] ss:$8 sps:$4 sm:$0xff]   ;;  %v958_v0 = vld [vmem:[%s1312_s1 + $0x120] ss:$8 sps:$4 sm:$0xff]   ;;  %v963_v1 = vld [vmem:[%s1312_s1 + $0x134] ss:$8 sps:$4 sm:$0xff]  }
  0x13   :  { %393 = vmatpush1.bf16.msra.mxu0 %v917_v14  ;;  %848 = vmatpush3.bf16.msra.mxu1 %v987_v39  ;;  %v961_v2 = vld [vmem:[%s1312_s1 + $0x130] ss:$8 sps:$4 sm:$0xff]   ;;  %v966_v3 = vld [vmem:[%s1312_s1 + $0x144] ss:$8 sps:$4 sm:$0xff]   ;;  %v964_v4 = vld [vmem:[%s1312_s1 + $0x140] ss:$8 sps:$4 sm:$0xff]  }
  0x14   :  { %394 = vmatprep.subr.bf16.mxu0 %v918_v15  ;;  %849 = vmatprep.subr.bf16.mxu1 %v988_v40  ;;  %v969_v5 = vld [vmem:[%s1312_s1 + $0x154] ss:$8 sps:$4 sm:$0xff]   ;;  %v967_v6 = vld [vmem:[%s1312_s1 + $0x150] ss:$8 sps:$4 sm:$0xff]   ;;  %v972_v7 = vld [vmem:[%s1312_s1 + $0x164] ss:$8 sps:$4 sm:$0xff]  }
  0x15   :  { %v970_v8 = vld [vmem:[%s1312_s1 + $0x160] ss:$8 sps:$4 sm:$0xff]   ;;  %v975_v9 = vld [vmem:[%s1312_s1 + $0x174] ss:$8 sps:$4 sm:$0xff]   ;;  %v973_v10 = vld [vmem:[%s1312_s1 + $0x170] ss:$8 sps:$4 sm:$0xff]  }
  0x16   :  { %v978_v11 = vld [vmem:[%s1312_s1 + $0x184] ss:$8 sps:$4 sm:$0xff]   ;;  %v976_v12 = vld [vmem:[%s1312_s1 + $0x180] ss:$8 sps:$4 sm:$0xff]   ;;  %v981_v14 = vld [vmem:[%s1312_s1 + $0x194] ss:$8 sps:$4 sm:$0xff]  }
  0x17   :  { %395 = vmatpush1.bf16.msra.mxu0 %v920_v17  ;;  %850 = vmatpush3.bf16.msra.mxu1 %v989_v44  ;;  %v979_v15 = vld [vmem:[%s1312_s1 + $0x190] ss:$8 sps:$4 sm:$0xff]   ;;  %v998_v36 = vld [vmem:[%s1315_s5] sm:$0xff]   ;;  %v12_v44 = vstv %s1317_s6 }
  0x18   :  { %396 = vmatprep.subr.bf16.mxu0 %v921_v18  ;;  %851 = vmatprep.subr.bf16.mxu1 %v990_v45  ;;  %v994_v17 = vld [vmem:[%s1314_s3 + $0x70] sm:$0xff]   ;;  %v996_v19 = vld [vmem:[%s1314_s3 + $0x78] sm:$0xff]   ;;  %v1002_v40 = vld [vmem:[%s1315_s5 + $0x20] sm:$0xff]   ;;  %13 = vst [vmem:[#allocation2] sm:$0x1] %v12_v44 }
  0x19   :  { %v995_v18 = vld [vmem:[%s1314_s3 + $0x30] sm:$0xff]   ;;  %v997_v20 = vld [vmem:[%s1314_s3 + $0x38] sm:$0xff]  }
  0x1a   :  { %v1001_v39 = vld [vmem:[%s1315_s5 + $0x18] sm:$0xff]  }
  0x1b   :  { %397 = vmatpush1.bf16.msra.mxu0 %v923_v21  ;;  %852 = vmatpush3.bf16.msra.mxu1 %v991_v46  ;;  %v1007_v21 = vmov 0.0   ;;  %v817_v46 = vld [vmem:[%s1318_s4] ss:$0 sm:$0xff] }
  0x1c   :  { %398 = vmatprep.subr.bf16.mxu0 %v924_v22  ;;  %853 = vmatprep.subr.bf16.mxu1 %v992_v49  ;;  %v112_v22 = vsub.s32 0, %v1076_v13  ;;  %v999_v13 = vld [vmem:[%s1315_s5 + $0x8] sm:$0xff]  }
  0x1f   :  { %399 = vmatpush1.bf16.msra.mxu0 %v926_v25  ;;  %854 = vmatpush3.bf16.msra.mxu1 %v993_v51  ;;  %v113_v25 = vrot.slane %v108_v23, %v112_v22 }
  0x20   :  { %400 = vmatprep.subr.bf16.mxu0 %v927_v26  ;;  %855 = vmatprep.subr.bf16.mxu1 %v994_v17  ;;  %v117_v26 = vrot.slane %v108_v23, %v116_v24 }
  0x23   :  { %401 = vmatpush1.bf16.msra.mxu0 %v929_v27  ;;  %856 = vmatpush3.bf16.msra.mxu1 %v995_v18 }
  0x24   :  { %402 = vmatprep.subr.bf16.mxu0 %v930_v28  ;;  %857 = vmatprep.subr.bf16.mxu1 %v996_v19 }
  0x27   :  { %403 = vmatpush1.bf16.msra.mxu0 %v932_v29  ;;  %858 = vmatpush3.bf16.msra.mxu1 %v997_v20 }
  0x28   :  { %404 = vmatprep.subr.bf16.mxu0 %v933_v30  ;;  %874 = vmatprep.subr.bf16.mxu1 %v1007_v21 }
  0x2b   :  { %405 = vmatpush1.bf16.msra.mxu0 %v935_v33 }
  0x2c   :  { %406 = vmatprep.subr.bf16.mxu0 %v936_v37 }
  0x2f   :  { %407 = vmatpush1.bf16.msra.mxu0 %v938_v38  ;;  %v1000_v38 = vld [vmem:[%s1315_s5 + $0x10] sm:$0xff]  }
  0x30   :  { %408 = vmatprep.subr.bf16.mxu0 %v939_v41  ;;  %v1003_v41 = vld [vmem:[%s1315_s5 + $0x28] sm:$0xff]  }
  0x33   :  { %409 = vmatpush1.bf16.msra.mxu0 %v941_v42  ;;  %v1004_v42 = vld [vmem:[%s1315_s5 + $0x30] sm:$0xff]  }
  0x34   :  { %410 = vmatprep.subr.bf16.mxu0 %v942_v43  ;;  %v1005_v43 = vld [vmem:[%s1315_s5 + $0x38] sm:$0xff]  }
  0x37   :  { %411 = vmatpush1.bf16.msra.mxu0 %v944_v47 }
  0x38   :  { %412 = vmatprep.subr.bf16.mxu0 %v945_v50 }
  0x3b   :  { %413 = vmatpush1.bf16.msra.mxu0 %v947_v52 }
  0x3c   :  { %414 = vmatprep.subr.bf16.mxu0 %v948_v54  ;;  %v834_v54 = vld [vmem:[#allocation2] ss:$0 sm:$0xff] }
  0x3f   :  { %415 = vmatpush1.bf16.msra.mxu0 %v950_v55 }
  0x40   :  { %425 = vmatprep.subr.bf16.mxu0 %v954_v57 }
  0x42   :  { %417 = vmatmul.mubr.bf16.vlgmr.msra.gmra.mrb[0].mxu0 %v52_v58 }
  0x43   :  { %426 = vmatpush1.bf16.msra.mxu0 %v952_v59  ;;  %816 = vmatprep.mubr.msk.bf16.mxu0 %vm380_vm0, %v55_v60 }
  0x44   :  { %427 = vmatprep.subr.bf16.mxu0 %v957_v61 }
  0x47   :  { %428 = vmatpush1.bf16.msra.mxu0 %v955_v62 }
  0x48   :  { %429 = vmatprep.subr.bf16.mxu0 %v960_v63 }
  0x4b   :  { %430 = vmatpush1.bf16.msra.mxu0 %v958_v0 }
  0x4c   :  { %431 = vmatprep.subr.bf16.mxu0 %v963_v1 }
  0x4f   :  { %432 = vmatpush1.bf16.msra.mxu0 %v961_v2 }
  0x50   :  { %433 = vmatprep.subr.bf16.mxu0 %v966_v3 }
  0x53   :  { %434 = vmatpush1.bf16.msra.mxu0 %v964_v4 }
  0x54   :  { %435 = vmatprep.subr.bf16.mxu0 %v969_v5 }
  0x57   :  { %436 = vmatpush1.bf16.msra.mxu0 %v967_v6 }
  0x58   :  { %437 = vmatprep.subr.bf16.mxu0 %v972_v7 }
  0x5b   :  { %438 = vmatpush1.bf16.msra.mxu0 %v970_v8 }
  0x5c   :  { %439 = vmatprep.subr.bf16.mxu0 %v975_v9 }
  0x5f   :  { %440 = vmatpush1.bf16.msra.mxu0 %v973_v10 }
  0x60   :  { %441 = vmatprep.subr.bf16.mxu0 %v978_v11 }
  0x63   :  { %442 = vmatpush1.bf16.msra.mxu0 %v976_v12 }
  0x64   :  { %443 = vmatprep.subr.bf16.mxu0 %v981_v14 }
  0x67   :  { %444 = vmatpush1.bf16.msra.mxu0 %v979_v15 }
  0x6a   :  { %458 = vmatmul.mubr.bf16.vlgmr.msra.gmra.mrb[0].mxu0 %v54_v16 }
 0x13d   :  { %v459_v27 = vpop.f32.mrb[0].mxu0 }
 0x13e   :  { %v894_v28 = vadd.f32 %v459_v27, %v113_v25  ;;  %v461_v29 = vpop.f32.mrb[1].mxu0 }
 0x13f   :  { %v895_v30 = vadd.f32 %v461_v29, %v117_v26  ;;  %v463_v31 = vpop.f32.mrb[2].mxu0 }
 0x140   :  { %v466_v32 = vmax.f32 %v894_v28, 0.0  ;;  %v464_v33 = vpop.f32.mrb[3].mxu0 }
 0x141   :  { %v467_v34 = vmax.f32 %v895_v30, 0.0 }
 0x142   :  { %v468_v37 = vpack.c.bf16 %v466_v32, %v466_v32 }
 0x143   :  { %v469_v35 = vpack.c.bf16 %v467_v34, %v467_v34 }
 0x145   :  { %637 = vmatprep.mubr.bf16.mxu1 %v469_v35 }
 0x146   :  { %638 = vmatmul.mubr.bf16.vlgmr.msra.gmra.mrb[0].mxu1 %v468_v37 }
 0x147   :  { %875 = vmatpush3.bf16.msra.mxu1 %v998_v36  ;;  %890 = vmatprep.mubr.msk.bf16.mxu1 %vm1008_vm1, %v1007_v21 }
 0x148   :  { %876 = vmatprep.subr.bf16.mxu1 %v1007_v21 }
 0x14b   :  { %877 = vmatpush3.bf16.msra.mxu1 %v999_v13 }
 0x14c   :  { %878 = vmatprep.subr.bf16.mxu1 %v1007_v21 }
 0x14f   :  { %879 = vmatpush3.bf16.msra.mxu1 %v1000_v38 }
 0x150   :  { %880 = vmatprep.subr.bf16.mxu1 %v1007_v21 }
 0x153   :  { %881 = vmatpush3.bf16.msra.mxu1 %v1001_v39 }
 0x154   :  { %882 = vmatprep.subr.bf16.mxu1 %v1007_v21 }
 0x157   :  { %883 = vmatpush3.bf16.msra.mxu1 %v1002_v40 }
 0x158   :  { %884 = vmatprep.subr.bf16.mxu1 %v1007_v21 }
 0x15b   :  { %885 = vmatpush3.bf16.msra.mxu1 %v1003_v41 }
 0x15c   :  { %886 = vmatprep.subr.bf16.mxu1 %v1007_v21 }
 0x15f   :  { %887 = vmatpush3.bf16.msra.mxu1 %v1004_v42 }
 0x160   :  { %888 = vmatprep.subr.bf16.mxu1 %v1007_v21 }
 0x163   :  { %889 = vmatpush3.bf16.msra.mxu1 %v1005_v43 }
 0x219   :  { %v859_v45 = vpop.f32.mrb[0].mxu1 }
 0x21a   :  { %v860_v47 = vpop.f32.mrb[1].mxu1 }
 0x21b   :  { %v861_v48 = vadd.f32 %v860_v47, %v859_v45  ;;  %v862_v49 = vpop.f32.mrb[2].mxu1 }
 0x21c   :  { %v863_v50 = vpop.f32.mrb[3].mxu1 }
 0x21d   :  { %v640_v51 = vadd.f32 %v861_v48, %v817_v46 }
 0x21f   :  { %v645_v52 = vmax.f32 %v640_v51, 0.0 }
 0x221   :  { %v646_v53 = vpack.c.bf16 %v645_v52, %v645_v52 }
 0x223   :  { %891 = vmatmul.mubr.bf16.vlgmr.msra.gmra.mrb[4].mxu1 %v646_v53 }
 0x2f6   :  { %v752_v55 = vpop.f32.mrb[4].mxu1 }
 0x2f7   :  { %v753_v56 = vadd.f32 %v834_v54, %v752_v55  ;;  %v892_v57 = vpop.f32.mrb[5].mxu1 }
 0x2f8   :  { %v755_v58 = vpop.f32.mrb[6].mxu1 }
 0x2f9   :  { %759 = vst.msk [vmem:[%s1319_s7] sm:$0x3] %vm758_vm2, %v753_v56  ;;  %v893_v59 = vpop.f32.mrb[7].mxu1 }

</bundles_post_ra>
